<compile_context>
chip_gen: v5e
topology: v5e:2x2
jax: 0.10.0
libtpu: 0.0.40
codegen_flags: <defaults>
</compile_context>

<pallas_src>
import functools

import jax
import jax.numpy as jnp
from jax.experimental import pallas as pl
from jax.experimental.pallas import tpu as pltpu

_MIB = 1024 * 1024


def _round_up(x, m):
    return ((x + m - 1) // m) * m


def _sigmoid(v):
    # exp -> EUP, approximate reciprocal -> EUP vrcp (no full-precision divide)
    return pl.reciprocal(1.0 + jnp.exp(-v), approx=True)


# ----------------------------------------------------------------------------
# Fused kernel: multi-layer LSTM + temporal mean + linear head (one batch tile)
# ----------------------------------------------------------------------------
def _lstm_kernel(*refs, num_layers, seq_len, hidden, tile_b):
    """refs layout:
         zx0_ref  : (T*Bt, 4H) f32   layer-0 pre-activations (computed by XLA)
         whh0_ref : (H, 4H)    bf16  layer-0 recurrent weight (transposed)
         for l = 1..L-1: wih_ref (H,4H) bf16, whh_ref (H,4H) bf16, b_ref (1,4H) f32
         wout_ref : (H, Cp)    f32
         bout_ref : (1, Cp)    f32
         out_ref  : (Bt, Cp)   f32
         [zx_ref   (T*Bt,4H) f32, hseq_ref (T*Bt,H) f32]  scratch, only if L > 1
       Rows of zx0/zx/hseq are time-major: row = t*Bt + b.
    """
    H, T, Bt, L = hidden, seq_len, tile_b, num_layers
    G = 4 * H

    zx0_ref = refs[0]
    whh0_ref = refs[1]
    layer_refs = [(refs[2 + 3 * (l - 1)], refs[3 + 3 * (l - 1)],
                   refs[4 + 3 * (l - 1)]) for l in range(1, L)]
    wout_ref = refs[3 * L - 1]
    bout_ref = refs[3 * L]
    out_ref = refs[3 * L + 1]
    if L > 1:
        zx_ref = refs[3 * L + 2]
        hseq_ref = refs[3 * L + 3]

    def gates(z):
        if G <= 128:
            # full lane-dense transcendentals, then slice the gates out
            zs = _sigmoid(z)
            zt = jnp.tanh(z)
            return (zs[:, 0:H], zs[:, H:2 * H],
                    zt[:, 2 * H:3 * H], zs[:, 3 * H:4 * H])
        return (_sigmoid(z[:, 0:H]), _sigmoid(z[:, H:2 * H]),
                jnp.tanh(z[:, 2 * H:3 * H]), _sigmoid(z[:, 3 * H:4 * H]))

    unroll = T if T <= 16 else 4
    zeros = jnp.zeros((Bt, H), jnp.float32)
    hsum = zeros

    for l in range(L):
        last = (l == L - 1)
        if l == 0:
            whh = whh0_ref[...]                                  # (H,4H) bf16

            def read_z(row):
                return zx0_ref[pl.ds(row, Bt), :]
        else:
            wih_ref, whh_ref, b_ref = layer_refs[l - 1]
            whh = whh_ref[...]
            # Hoisted input projection for ALL timesteps of this layer: one
            # lane-dense bf16 MXU matmul; both LSTM biases folded in once.
            zx_ref[...] = (
                jnp.dot(hseq_ref[...].astype(jnp.bfloat16), wih_ref[...],
                        preferred_element_type=jnp.float32)
                + b_ref[...])

            def read_z(row):
                return zx_ref[pl.ds(row, Bt), :]

        def step(t, carry, read_z=read_z, whh=whh, last=last, write_h=not last):
            h, c, hs = carry
            row = pl.multiple_of(t * Bt, Bt)                     # 8-aligned
            # bf16 MXU operands, f32 accumulation; gate math in f32.
            z = read_z(row) + jnp.dot(h.astype(jnp.bfloat16), whh,
                                      preferred_element_type=jnp.float32)
            i_g, f_g, g_g, o_g = gates(z)                        # PyTorch order i,f,g,o
            c_n = f_g * c + i_g * g_g
            h_n = o_g * jnp.tanh(c_n)
            if write_h:
                hseq_ref[pl.ds(row, Bt), :] = h_n                # feeds layer l+1
            return h_n, c_n, (hs + h_n) if last else hs

        _, _, acc = jax.lax.fori_loop(0, T, step, (zeros, zeros, zeros),
                                      unroll=unroll)
        if last:
            hsum = acc

    # Temporal mean (accumulated in the carry) + classifier head (lane-padded).
    hmean = hsum * (1.0 / T)
    out = (jnp.dot(hmean, wout_ref[...], preferred_element_type=jnp.float32)
           + bout_ref[...])
    out_ref[...] = out.astype(out_ref.dtype)


# ----------------------------------------------------------------------------
# VMEM-aware tiling helpers
# ----------------------------------------------------------------------------
def _vmem_budget():
    """(tile-selection budget, scoped vmem limit) in bytes — conservative so
    the same kernel fits v5e/v6e (128 MiB) and v7x (64 MiB per TensorCore)."""
    try:
        cap = int(pltpu.get_tpu_info().vmem_capacity_bytes)
    except Exception:  # interpret mode / older API
        cap = 64 * _MIB
    budget = min(cap // 2, 48 * _MIB)
    vmem_limit = max(32 * _MIB, min((cap * 3) // 4, 64 * _MIB))
    return budget, vmem_limit


def _footprint_bytes(tile_b, T, H, L, Cp):
    """Rough per-grid-step VMEM footprint (double buffers included)."""
    G = 4 * H
    Gp = _round_up(G, 128)
    Hp = _round_up(H, 128)
    rows = T * tile_b
    f = 2 * rows * Gp * 4                      # zx0 input block (f32, 2 bufs)
    if L > 1:
        f += rows * Gp * 4                     # zx scratch (f32)
        f += rows * Hp * 4                     # hseq scratch (f32)
    f += (2 * L - 1) * _round_up(H, 16) * Gp * 2   # bf16 weights (fetched once)
    f += L * 8 * Gp * 4                        # biases (sublane-padded)
    f += _round_up(H, 8) * Cp * 4 + 8 * Cp * 4     # head weights
    f += 2 * tile_b * Cp * 4                   # output block (2 bufs)
    return f


def _pick_batch_tile(B, T, H, L, Cp, budget):
    """Largest sublane-aligned batch tile under the VMEM budget; force at
    least two grid tiles when B > 8 so both v7x TensorCores get work."""
    b8 = max(8, _round_up(B, 8))
    for t in (128, 64, 32, 16, 8):
        if t > b8:
            continue
        if B > 8 and (B + t - 1) // t < 2:
            continue
        if _footprint_bytes(t, T, H, L, Cp) <= budget:
            return t
    return 8


# ----------------------------------------------------------------------------
# Wrapper: batch padding / tiling + pallas_call plumbing
# ----------------------------------------------------------------------------
def lstm_forward(x, params):
    """x: (B, T, input_size) float32  ->  (B, num_classes) float32."""
    B, T, I = x.shape
    H = params["hidden_size"]
    L = params["num_layers"]
    C = params["b_out"].shape[0]
    G = 4 * H
    Cp = _round_up(C, 128)

    budget, vmem_limit = _vmem_budget()
    tile_b = _pick_batch_tile(B, T, H, L, Cp, budget)
    b_pad = _round_up(B, tile_b)
    nb = b_pad // tile_b

    # Layer-0 input projection (K = input_size is tiny -> degenerate MXU
    # contraction): compute it with plain XLA and feed lane-dense (T*Bt, 4H)
    # gate pre-activations; costs the same VMEM as the lane-padded raw input.
    xp = jnp.pad(x.astype(jnp.float32), ((0, b_pad - B), (0, 0), (0, 0)))
    bias0 = (params["b_ih"][0] + params["b_hh"][0]).astype(jnp.float32)
    zx0 = jnp.dot(xp, params["w_ih"][0].astype(jnp.float32).T) + bias0
    # (b_pad, T, 4H) -> (nb, T*tile_b, 4H), rows time-major inside each tile
    zx0_tiles = (zx0.reshape(nb, tile_b, T, G)
                    .transpose(0, 2, 1, 3)
                    .reshape(nb, T * tile_b, G))

    operands = [zx0_tiles]
    in_specs = [pl.BlockSpec((None, T * tile_b, G), lambda i: (i, 0, 0))]

    whh0 = params["w_hh"][0].T.astype(jnp.bfloat16)              # (H, 4H)
    operands.append(whh0)
    in_specs.append(pl.BlockSpec(whh0.shape, lambda i: (0, 0)))

    for l in range(1, L):
        wih_t = params["w_ih"][l].T.astype(jnp.bfloat16)         # (H, 4H)
        whh_t = params["w_hh"][l].T.astype(jnp.bfloat16)         # (H, 4H)
        bias = (params["b_ih"][l] + params["b_hh"][l]).astype(jnp.float32)
        bias = bias.reshape(1, G)
        operands += [wih_t, whh_t, bias]
        in_specs += [pl.BlockSpec(wih_t.shape, lambda i: (0, 0)),
                     pl.BlockSpec(whh_t.shape, lambda i: (0, 0)),
                     pl.BlockSpec(bias.shape, lambda i: (0, 0))]

    # Classifier head, lane-padded to 128 so the final store is unmasked.
    wout_t = jnp.zeros((H, Cp), jnp.float32).at[:, :C].set(
        params["w_out"].astype(jnp.float32).T)
    bout = jnp.zeros((1, Cp), jnp.float32).at[0, :C].set(
        params["b_out"].astype(jnp.float32))
    operands += [wout_t, bout]
    in_specs += [pl.BlockSpec((H, Cp), lambda i: (0, 0)),
                 pl.BlockSpec((1, Cp), lambda i: (0, 0))]

    scratch = []
    if L > 1:
        scratch = [pltpu.VMEM((T * tile_b, G), jnp.float32),     # zx (layers >= 1)
                   pltpu.VMEM((T * tile_b, H), jnp.float32)]     # hseq

    # Advisory cost: constant-index-map weights are fetched once (no nb factor).
    flops = 2 * b_pad * T * H * G * (2 * L - 1) + 2 * b_pad * H * Cp
    transcendentals = L * T * b_pad * (2 * G + H)
    weight_bytes = sum(int(o.size) * o.dtype.itemsize for o in operands[1:])
    bytes_accessed = 4 * (int(zx0_tiles.size) + b_pad * Cp) + weight_bytes

    kern = functools.partial(_lstm_kernel, num_layers=L, seq_len=T,
                             hidden=H, tile_b=tile_b)

    out = pl.pallas_call(
        kern,
        out_shape=jax.ShapeDtypeStruct((nb, tile_b, Cp), jnp.float32),
        grid=(nb,),
        in_specs=in_specs,
        out_specs=pl.BlockSpec((None, tile_b, Cp), lambda i: (i, 0, 0)),
        scratch_shapes=scratch,
        compiler_params=pltpu.CompilerParams(
            dimension_semantics=("parallel",),
            vmem_limit_bytes=int(vmem_limit)),
        cost_estimate=pl.CostEstimate(flops=int(flops),
                                      transcendentals=int(transcendentals),
                                      bytes_accessed=int(bytes_accessed)),
    )(*operands)

    return out.reshape(b_pad, Cp)[:B, :C]


# ----------------------------------------------------------------------------
# Deterministic PyTorch-style parameters + pure-JAX reference for validation
# ----------------------------------------------------------------------------
def init_params(key, *, input_size, hidden_size, num_layers, num_classes):
    k = hidden_size ** -0.5
    keys = jax.random.split(key, 4 * num_layers + 2)

    def unif(rk, shape):
        return jax.random.uniform(rk, shape, jnp.float32, -k, k)

    w_ih, w_hh, b_ih, b_hh = [], [], [], []
    for l in range(num_layers):
        in_l = input_size if l == 0 else hidden_size
        w_ih.append(unif(keys[4 * l + 0], (4 * hidden_size, in_l)))
        w_hh.append(unif(keys[4 * l + 1], (4 * hidden_size, hidden_size)))
        b_ih.append(unif(keys[4 * l + 2], (4 * hidden_size,)))
        b_hh.append(unif(keys[4 * l + 3], (4 * hidden_size,)))

    w_out = unif(keys[-2], (num_classes, hidden_size))
    b_out = unif(keys[-1], (num_classes,))
    return dict(hidden_size=hidden_size, num_layers=num_layers,
                w_ih=w_ih, w_hh=w_hh, b_ih=b_ih, b_hh=b_hh,
                w_out=w_out, b_out=b_out)


def lstm_reference(x, params):
    H = params["hidden_size"]
    h_seq = x
    for l in range(params["num_layers"]):
        wih, whh = params["w_ih"][l], params["w_hh"][l]
        b = params["b_ih"][l] + params["b_hh"][l]
        B = h_seq.shape[0]

        def step(carry, x_t, wih=wih, whh=whh, b=b):
            h, c = carry
            z = x_t @ wih.T + h @ whh.T + b
            i = jax.nn.sigmoid(z[:, 0:H])
            f = jax.nn.sigmoid(z[:, H:2 * H])
            g = jnp.tanh(z[:, 2 * H:3 * H])
            o = jax.nn.sigmoid(z[:, 3 * H:4 * H])
            c = f * c + i * g
            h = o * jnp.tanh(c)
            return (h, c), h

        init = (jnp.zeros((B, H), jnp.float32), jnp.zeros((B, H), jnp.float32))
        _, hs = jax.lax.scan(step, init, jnp.swapaxes(h_seq, 0, 1))
        h_seq = jnp.swapaxes(hs, 0, 1)

    feat = h_seq.mean(axis=1)
    return feat @ params["w_out"].T + params["b_out"]


# ----------------------------------------------------------------------------
if __name__ == "__main__":
    B, T = 2, 8
    input_size, hidden_size, num_layers, num_classes = 4, 32, 2, 5

    key = jax.random.PRNGKey(0)
    k_x, k_p = jax.random.split(key)
    x = jax.random.normal(k_x, (B, T, input_size), dtype=jnp.float32)
    params = init_params(k_p, input_size=input_size, hidden_size=hidden_size,
                         num_layers=num_layers, num_classes=num_classes)

    out = jax.block_until_ready(lstm_forward(x, params))
    ref = jax.block_until_ready(lstm_reference(x, params))

    assert out.shape == (B, num_classes)
    assert bool(jnp.all(jnp.isfinite(out)))
    assert bool(jnp.allclose(out, ref, atol=2e-2, rtol=2e-2)), (
        f"max abs diff {float(jnp.max(jnp.abs(out - ref)))}")
    print("KERNEL_OK")
</pallas_src>

<mosaic_0001>
module attributes {stable_mosaic.version = 11 : i64} {
  func.func @_lstm_kernel(%arg0: i32, %arg1: memref<1x64x128xf32, #tpu.memory_space<vmem>>, %arg2: memref<32x128xbf16, #tpu.memory_space<vmem>>, %arg3: memref<32x128xbf16, #tpu.memory_space<vmem>>, %arg4: memref<32x128xbf16, #tpu.memory_space<vmem>>, %arg5: memref<1x128xf32, #tpu.memory_space<vmem>>, %arg6: memref<32x128xf32, #tpu.memory_space<vmem>>, %arg7: memref<1x128xf32, #tpu.memory_space<vmem>>, %arg8: memref<1x8x128xf32, #tpu.memory_space<vmem>>, %arg9: memref<64x128xf32, #tpu.memory_space<vmem>>, %arg10: memref<64x32xf32, #tpu.memory_space<vmem>>) attributes {dimension_semantics = [#tpu.dimension_semantics<parallel>], iteration_bounds = array<i64: 1>, scalar_prefetch = 0 : i64, scratch_operands = 2 : i64, tpu.core_type = #tpu.core_type<tc>, window_params = [{transform_indices = @transform_0, window_bounds = array<i64: 1, 64, 128>}, {pipeline_mode = #tpu.pipeline_mode<synchronous>, transform_indices = @transform_1, window_bounds = array<i64: 32, 128>}, {pipeline_mode = #tpu.pipeline_mode<synchronous>, transform_indices = @transform_2, window_bounds = array<i64: 32, 128>}, {pipeline_mode = #tpu.pipeline_mode<synchronous>, transform_indices = @transform_3, window_bounds = array<i64: 32, 128>}, {pipeline_mode = #tpu.pipeline_mode<synchronous>, transform_indices = @transform_4, window_bounds = array<i64: 1, 128>}, {pipeline_mode = #tpu.pipeline_mode<synchronous>, transform_indices = @transform_5, window_bounds = array<i64: 32, 128>}, {pipeline_mode = #tpu.pipeline_mode<synchronous>, transform_indices = @transform_6, window_bounds = array<i64: 1, 128>}, {transform_indices = @transform_7, window_bounds = array<i64: 1, 8, 128>}]} {
    %cst = arith.constant 0.000000e+00 : f32
    %0 = vector.broadcast %cst : f32 to vector<8x32xf32>
    %c0 = arith.constant 0 : index
    %c0_0 = arith.constant 0 : index
    %1 = vector.load %arg2[%c0, %c0_0] : memref<32x128xbf16, #tpu.memory_space<vmem>>, vector<32x128xbf16>
    %c0_i32 = arith.constant 0 : i32
    %c8_i32 = arith.constant 8 : i32
    %2 = arith.muli %c0_i32, %c8_i32 : i32
    %3 = tpu.assume_multiple %2, 8 : i32
    %c0_1 = arith.constant 0 : index
    %4 = arith.index_cast %3 : i32 to index
    %c0_2 = arith.constant 0 : index
    %5 = vector.load %arg1[%c0_1, %4, %c0_2] : memref<1x64x128xf32, #tpu.memory_space<vmem>>, vector<1x8x128xf32>
    %6 = vector.shape_cast %5 : vector<1x8x128xf32> to vector<8x128xf32>
    %7 = arith.truncf %0 : vector<8x32xf32> to vector<8x32xbf16>
    %cst_3 = arith.constant dense<0.000000e+00> : vector<8x128xf32>
    %8 = tpu.matmul %7, %1, %cst_3 {dimension_numbers = #tpu.dot_dimension_numbers<[1], [0], [0], [1], [0, 0, 1, 1], [], []>} : vector<8x32xbf16>, vector<32x128xbf16>, vector<8x128xf32> -> vector<8x128xf32>
    %9 = arith.addf %6, %8 : vector<8x128xf32>
    %cst_4 = arith.constant 0.000000e+00 : f32
    %10 = vector.broadcast %cst_4 : f32 to vector<8x128xf32>
    %11 = arith.subf %10, %9 : vector<8x128xf32>
    %12 = math.exp %11 : vector<8x128xf32>
    %cst_5 = arith.constant 1.000000e+00 : f32
    %13 = vector.broadcast %cst_5 : f32 to vector<8x128xf32>
    %14 = arith.addf %13, %12 : vector<8x128xf32>
    %15 = tpu.reciprocal %14 {approx = true} : vector<8x128xf32> -> vector<8x128xf32>
    %16 = math.tanh %9 : vector<8x128xf32>
    %17 = vector.extract_strided_slice %15 {offsets = [0, 0], sizes = [8, 32], strides = [1, 1]} : vector<8x128xf32> to vector<8x32xf32>
    %18 = vector.extract_strided_slice %15 {offsets = [0, 32], sizes = [8, 32], strides = [1, 1]} : vector<8x128xf32> to vector<8x32xf32>
    %19 = vector.extract_strided_slice %16 {offsets = [0, 64], sizes = [8, 32], strides = [1, 1]} : vector<8x128xf32> to vector<8x32xf32>
    %20 = vector.extract_strided_slice %15 {offsets = [0, 96], sizes = [8, 32], strides = [1, 1]} : vector<8x128xf32> to vector<8x32xf32>
    %21 = arith.mulf %18, %0 : vector<8x32xf32>
    %22 = arith.mulf %17, %19 : vector<8x32xf32>
    %23 = arith.addf %21, %22 : vector<8x32xf32>
    %24 = math.tanh %23 : vector<8x32xf32>
    %25 = arith.mulf %20, %24 : vector<8x32xf32>
    %26 = arith.index_cast %3 : i32 to index
    %c0_6 = arith.constant 0 : index
    %27 = vector.load %arg10[%26, %c0_6] : memref<64x32xf32, #tpu.memory_space<vmem>>, vector<8x32xf32>
    tpu.vector_store %arg10[%26, %c0_6], %25 {strides = array<i32>} : memref<64x32xf32, #tpu.memory_space<vmem>>, vector<8x32xf32>,
    %c1_i32 = arith.constant 1 : i32
    %c8_i32_7 = arith.constant 8 : i32
    %28 = arith.muli %c1_i32, %c8_i32_7 : i32
    %29 = tpu.assume_multiple %28, 8 : i32
    %c0_8 = arith.constant 0 : index
    %30 = arith.index_cast %29 : i32 to index
    %c0_9 = arith.constant 0 : index
    %31 = vector.load %arg1[%c0_8, %30, %c0_9] : memref<1x64x128xf32, #tpu.memory_space<vmem>>, vector<1x8x128xf32>
    %32 = vector.shape_cast %31 : vector<1x8x128xf32> to vector<8x128xf32>
    %33 = arith.truncf %25 : vector<8x32xf32> to vector<8x32xbf16>
    %cst_10 = arith.constant dense<0.000000e+00> : vector<8x128xf32>
    %34 = tpu.matmul %33, %1, %cst_10 {dimension_numbers = #tpu.dot_dimension_numbers<[1], [0], [0], [1], [0, 0, 1, 1], [], []>} : vector<8x32xbf16>, vector<32x128xbf16>, vector<8x128xf32> -> vector<8x128xf32>
    %35 = arith.addf %32, %34 : vector<8x128xf32>
    %cst_11 = arith.constant 0.000000e+00 : f32
    %36 = vector.broadcast %cst_11 : f32 to vector<8x128xf32>
    %37 = arith.subf %36, %35 : vector<8x128xf32>
    %38 = math.exp %37 : vector<8x128xf32>
    %cst_12 = arith.constant 1.000000e+00 : f32
    %39 = vector.broadcast %cst_12 : f32 to vector<8x128xf32>
    %40 = arith.addf %39, %38 : vector<8x128xf32>
    %41 = tpu.reciprocal %40 {approx = true} : vector<8x128xf32> -> vector<8x128xf32>
    %42 = math.tanh %35 : vector<8x128xf32>
    %43 = vector.extract_strided_slice %41 {offsets = [0, 0], sizes = [8, 32], strides = [1, 1]} : vector<8x128xf32> to vector<8x32xf32>
    %44 = vector.extract_strided_slice %41 {offsets = [0, 32], sizes = [8, 32], strides = [1, 1]} : vector<8x128xf32> to vector<8x32xf32>
    %45 = vector.extract_strided_slice %42 {offsets = [0, 64], sizes = [8, 32], strides = [1, 1]} : vector<8x128xf32> to vector<8x32xf32>
    %46 = vector.extract_strided_slice %41 {offsets = [0, 96], sizes = [8, 32], strides = [1, 1]} : vector<8x128xf32> to vector<8x32xf32>
    %47 = arith.mulf %44, %23 : vector<8x32xf32>
    %48 = arith.mulf %43, %45 : vector<8x32xf32>
    %49 = arith.addf %47, %48 : vector<8x32xf32>
    %50 = math.tanh %49 : vector<8x32xf32>
    %51 = arith.mulf %46, %50 : vector<8x32xf32>
    %52 = arith.index_cast %29 : i32 to index
    %c0_13 = arith.constant 0 : index
    %53 = vector.load %arg10[%52, %c0_13] : memref<64x32xf32, #tpu.memory_space<vmem>>, vector<8x32xf32>
    tpu.vector_store %arg10[%52, %c0_13], %51 {strides = array<i32>} : memref<64x32xf32, #tpu.memory_space<vmem>>, vector<8x32xf32>,
    %c2_i32 = arith.constant 2 : i32
    %c8_i32_14 = arith.constant 8 : i32
    %54 = arith.muli %c2_i32, %c8_i32_14 : i32
    %55 = tpu.assume_multiple %54, 8 : i32
    %c0_15 = arith.constant 0 : index
    %56 = arith.index_cast %55 : i32 to index
    %c0_16 = arith.constant 0 : index
    %57 = vector.load %arg1[%c0_15, %56, %c0_16] : memref<1x64x128xf32, #tpu.memory_space<vmem>>, vector<1x8x128xf32>
    %58 = vector.shape_cast %57 : vector<1x8x128xf32> to vector<8x128xf32>
    %59 = arith.truncf %51 : vector<8x32xf32> to vector<8x32xbf16>
    %cst_17 = arith.constant dense<0.000000e+00> : vector<8x128xf32>
    %60 = tpu.matmul %59, %1, %cst_17 {dimension_numbers = #tpu.dot_dimension_numbers<[1], [0], [0], [1], [0, 0, 1, 1], [], []>} : vector<8x32xbf16>, vector<32x128xbf16>, vector<8x128xf32> -> vector<8x128xf32>
    %61 = arith.addf %58, %60 : vector<8x128xf32>
    %cst_18 = arith.constant 0.000000e+00 : f32
    %62 = vector.broadcast %cst_18 : f32 to vector<8x128xf32>
    %63 = arith.subf %62, %61 : vector<8x128xf32>
    %64 = math.exp %63 : vector<8x128xf32>
    %cst_19 = arith.constant 1.000000e+00 : f32
    %65 = vector.broadcast %cst_19 : f32 to vector<8x128xf32>
    %66 = arith.addf %65, %64 : vector<8x128xf32>
    %67 = tpu.reciprocal %66 {approx = true} : vector<8x128xf32> -> vector<8x128xf32>
    %68 = math.tanh %61 : vector<8x128xf32>
    %69 = vector.extract_strided_slice %67 {offsets = [0, 0], sizes = [8, 32], strides = [1, 1]} : vector<8x128xf32> to vector<8x32xf32>
    %70 = vector.extract_strided_slice %67 {offsets = [0, 32], sizes = [8, 32], strides = [1, 1]} : vector<8x128xf32> to vector<8x32xf32>
    %71 = vector.extract_strided_slice %68 {offsets = [0, 64], sizes = [8, 32], strides = [1, 1]} : vector<8x128xf32> to vector<8x32xf32>
    %72 = vector.extract_strided_slice %67 {offsets = [0, 96], sizes = [8, 32], strides = [1, 1]} : vector<8x128xf32> to vector<8x32xf32>
    %73 = arith.mulf %70, %49 : vector<8x32xf32>
    %74 = arith.mulf %69, %71 : vector<8x32xf32>
    %75 = arith.addf %73, %74 : vector<8x32xf32>
    %76 = math.tanh %75 : vector<8x32xf32>
    %77 = arith.mulf %72, %76 : vector<8x32xf32>
    %78 = arith.index_cast %55 : i32 to index
    %c0_20 = arith.constant 0 : index
    %79 = vector.load %arg10[%78, %c0_20] : memref<64x32xf32, #tpu.memory_space<vmem>>, vector<8x32xf32>
    tpu.vector_store %arg10[%78, %c0_20], %77 {strides = array<i32>} : memref<64x32xf32, #tpu.memory_space<vmem>>, vector<8x32xf32>,
    %c3_i32 = arith.constant 3 : i32
    %c8_i32_21 = arith.constant 8 : i32
    %80 = arith.muli %c3_i32, %c8_i32_21 : i32
    %81 = tpu.assume_multiple %80, 8 : i32
    %c0_22 = arith.constant 0 : index
    %82 = arith.index_cast %81 : i32 to index
    %c0_23 = arith.constant 0 : index
    %83 = vector.load %arg1[%c0_22, %82, %c0_23] : memref<1x64x128xf32, #tpu.memory_space<vmem>>, vector<1x8x128xf32>
    %84 = vector.shape_cast %83 : vector<1x8x128xf32> to vector<8x128xf32>
    %85 = arith.truncf %77 : vector<8x32xf32> to vector<8x32xbf16>
    %cst_24 = arith.constant dense<0.000000e+00> : vector<8x128xf32>
    %86 = tpu.matmul %85, %1, %cst_24 {dimension_numbers = #tpu.dot_dimension_numbers<[1], [0], [0], [1], [0, 0, 1, 1], [], []>} : vector<8x32xbf16>, vector<32x128xbf16>, vector<8x128xf32> -> vector<8x128xf32>
    %87 = arith.addf %84, %86 : vector<8x128xf32>
    %cst_25 = arith.constant 0.000000e+00 : f32
    %88 = vector.broadcast %cst_25 : f32 to vector<8x128xf32>
    %89 = arith.subf %88, %87 : vector<8x128xf32>
    %90 = math.exp %89 : vector<8x128xf32>
    %cst_26 = arith.constant 1.000000e+00 : f32
    %91 = vector.broadcast %cst_26 : f32 to vector<8x128xf32>
    %92 = arith.addf %91, %90 : vector<8x128xf32>
    %93 = tpu.reciprocal %92 {approx = true} : vector<8x128xf32> -> vector<8x128xf32>
    %94 = math.tanh %87 : vector<8x128xf32>
    %95 = vector.extract_strided_slice %93 {offsets = [0, 0], sizes = [8, 32], strides = [1, 1]} : vector<8x128xf32> to vector<8x32xf32>
    %96 = vector.extract_strided_slice %93 {offsets = [0, 32], sizes = [8, 32], strides = [1, 1]} : vector<8x128xf32> to vector<8x32xf32>
    %97 = vector.extract_strided_slice %94 {offsets = [0, 64], sizes = [8, 32], strides = [1, 1]} : vector<8x128xf32> to vector<8x32xf32>
    %98 = vector.extract_strided_slice %93 {offsets = [0, 96], sizes = [8, 32], strides = [1, 1]} : vector<8x128xf32> to vector<8x32xf32>
    %99 = arith.mulf %96, %75 : vector<8x32xf32>
    %100 = arith.mulf %95, %97 : vector<8x32xf32>
    %101 = arith.addf %99, %100 : vector<8x32xf32>
    %102 = math.tanh %101 : vector<8x32xf32>
    %103 = arith.mulf %98, %102 : vector<8x32xf32>
    %104 = arith.index_cast %81 : i32 to index
    %c0_27 = arith.constant 0 : index
    %105 = vector.load %arg10[%104, %c0_27] : memref<64x32xf32, #tpu.memory_space<vmem>>, vector<8x32xf32>
    tpu.vector_store %arg10[%104, %c0_27], %103 {strides = array<i32>} : memref<64x32xf32, #tpu.memory_space<vmem>>, vector<8x32xf32>,
    %c4_i32 = arith.constant 4 : i32
    %c8_i32_28 = arith.constant 8 : i32
    %106 = arith.muli %c4_i32, %c8_i32_28 : i32
    %107 = tpu.assume_multiple %106, 8 : i32
    %c0_29 = arith.constant 0 : index
    %108 = arith.index_cast %107 : i32 to index
    %c0_30 = arith.constant 0 : index
    %109 = vector.load %arg1[%c0_29, %108, %c0_30] : memref<1x64x128xf32, #tpu.memory_space<vmem>>, vector<1x8x128xf32>
    %110 = vector.shape_cast %109 : vector<1x8x128xf32> to vector<8x128xf32>
    %111 = arith.truncf %103 : vector<8x32xf32> to vector<8x32xbf16>
    %cst_31 = arith.constant dense<0.000000e+00> : vector<8x128xf32>
    %112 = tpu.matmul %111, %1, %cst_31 {dimension_numbers = #tpu.dot_dimension_numbers<[1], [0], [0], [1], [0, 0, 1, 1], [], []>} : vector<8x32xbf16>, vector<32x128xbf16>, vector<8x128xf32> -> vector<8x128xf32>
    %113 = arith.addf %110, %112 : vector<8x128xf32>
    %cst_32 = arith.constant 0.000000e+00 : f32
    %114 = vector.broadcast %cst_32 : f32 to vector<8x128xf32>
    %115 = arith.subf %114, %113 : vector<8x128xf32>
    %116 = math.exp %115 : vector<8x128xf32>
    %cst_33 = arith.constant 1.000000e+00 : f32
    %117 = vector.broadcast %cst_33 : f32 to vector<8x128xf32>
    %118 = arith.addf %117, %116 : vector<8x128xf32>
    %119 = tpu.reciprocal %118 {approx = true} : vector<8x128xf32> -> vector<8x128xf32>
    %120 = math.tanh %113 : vector<8x128xf32>
    %121 = vector.extract_strided_slice %119 {offsets = [0, 0], sizes = [8, 32], strides = [1, 1]} : vector<8x128xf32> to vector<8x32xf32>
    %122 = vector.extract_strided_slice %119 {offsets = [0, 32], sizes = [8, 32], strides = [1, 1]} : vector<8x128xf32> to vector<8x32xf32>
    %123 = vector.extract_strided_slice %120 {offsets = [0, 64], sizes = [8, 32], strides = [1, 1]} : vector<8x128xf32> to vector<8x32xf32>
    %124 = vector.extract_strided_slice %119 {offsets = [0, 96], sizes = [8, 32], strides = [1, 1]} : vector<8x128xf32> to vector<8x32xf32>
    %125 = arith.mulf %122, %101 : vector<8x32xf32>
    %126 = arith.mulf %121, %123 : vector<8x32xf32>
    %127 = arith.addf %125, %126 : vector<8x32xf32>
    %128 = math.tanh %127 : vector<8x32xf32>
    %129 = arith.mulf %124, %128 : vector<8x32xf32>
    %130 = arith.index_cast %107 : i32 to index
    %c0_34 = arith.constant 0 : index
    %131 = vector.load %arg10[%130, %c0_34] : memref<64x32xf32, #tpu.memory_space<vmem>>, vector<8x32xf32>
    tpu.vector_store %arg10[%130, %c0_34], %129 {strides = array<i32>} : memref<64x32xf32, #tpu.memory_space<vmem>>, vector<8x32xf32>,
    %c5_i32 = arith.constant 5 : i32
    %c8_i32_35 = arith.constant 8 : i32
    %132 = arith.muli %c5_i32, %c8_i32_35 : i32
    %133 = tpu.assume_multiple %132, 8 : i32
    %c0_36 = arith.constant 0 : index
    %134 = arith.index_cast %133 : i32 to index
    %c0_37 = arith.constant 0 : index
    %135 = vector.load %arg1[%c0_36, %134, %c0_37] : memref<1x64x128xf32, #tpu.memory_space<vmem>>, vector<1x8x128xf32>
    %136 = vector.shape_cast %135 : vector<1x8x128xf32> to vector<8x128xf32>
    %137 = arith.truncf %129 : vector<8x32xf32> to vector<8x32xbf16>
    %cst_38 = arith.constant dense<0.000000e+00> : vector<8x128xf32>
    %138 = tpu.matmul %137, %1, %cst_38 {dimension_numbers = #tpu.dot_dimension_numbers<[1], [0], [0], [1], [0, 0, 1, 1], [], []>} : vector<8x32xbf16>, vector<32x128xbf16>, vector<8x128xf32> -> vector<8x128xf32>
    %139 = arith.addf %136, %138 : vector<8x128xf32>
    %cst_39 = arith.constant 0.000000e+00 : f32
    %140 = vector.broadcast %cst_39 : f32 to vector<8x128xf32>
    %141 = arith.subf %140, %139 : vector<8x128xf32>
    %142 = math.exp %141 : vector<8x128xf32>
    %cst_40 = arith.constant 1.000000e+00 : f32
    %143 = vector.broadcast %cst_40 : f32 to vector<8x128xf32>
    %144 = arith.addf %143, %142 : vector<8x128xf32>
    %145 = tpu.reciprocal %144 {approx = true} : vector<8x128xf32> -> vector<8x128xf32>
    %146 = math.tanh %139 : vector<8x128xf32>
    %147 = vector.extract_strided_slice %145 {offsets = [0, 0], sizes = [8, 32], strides = [1, 1]} : vector<8x128xf32> to vector<8x32xf32>
    %148 = vector.extract_strided_slice %145 {offsets = [0, 32], sizes = [8, 32], strides = [1, 1]} : vector<8x128xf32> to vector<8x32xf32>
    %149 = vector.extract_strided_slice %146 {offsets = [0, 64], sizes = [8, 32], strides = [1, 1]} : vector<8x128xf32> to vector<8x32xf32>
    %150 = vector.extract_strided_slice %145 {offsets = [0, 96], sizes = [8, 32], strides = [1, 1]} : vector<8x128xf32> to vector<8x32xf32>
    %151 = arith.mulf %148, %127 : vector<8x32xf32>
    %152 = arith.mulf %147, %149 : vector<8x32xf32>
    %153 = arith.addf %151, %152 : vector<8x32xf32>
    %154 = math.tanh %153 : vector<8x32xf32>
    %155 = arith.mulf %150, %154 : vector<8x32xf32>
    %156 = arith.index_cast %133 : i32 to index
    %c0_41 = arith.constant 0 : index
    %157 = vector.load %arg10[%156, %c0_41] : memref<64x32xf32, #tpu.memory_space<vmem>>, vector<8x32xf32>
    tpu.vector_store %arg10[%156, %c0_41], %155 {strides = array<i32>} : memref<64x32xf32, #tpu.memory_space<vmem>>, vector<8x32xf32>,
    %c6_i32 = arith.constant 6 : i32
    %c8_i32_42 = arith.constant 8 : i32
    %158 = arith.muli %c6_i32, %c8_i32_42 : i32
    %159 = tpu.assume_multiple %158, 8 : i32
    %c0_43 = arith.constant 0 : index
    %160 = arith.index_cast %159 : i32 to index
    %c0_44 = arith.constant 0 : index
    %161 = vector.load %arg1[%c0_43, %160, %c0_44] : memref<1x64x128xf32, #tpu.memory_space<vmem>>, vector<1x8x128xf32>
    %162 = vector.shape_cast %161 : vector<1x8x128xf32> to vector<8x128xf32>
    %163 = arith.truncf %155 : vector<8x32xf32> to vector<8x32xbf16>
    %cst_45 = arith.constant dense<0.000000e+00> : vector<8x128xf32>
    %164 = tpu.matmul %163, %1, %cst_45 {dimension_numbers = #tpu.dot_dimension_numbers<[1], [0], [0], [1], [0, 0, 1, 1], [], []>} : vector<8x32xbf16>, vector<32x128xbf16>, vector<8x128xf32> -> vector<8x128xf32>
    %165 = arith.addf %162, %164 : vector<8x128xf32>
    %cst_46 = arith.constant 0.000000e+00 : f32
    %166 = vector.broadcast %cst_46 : f32 to vector<8x128xf32>
    %167 = arith.subf %166, %165 : vector<8x128xf32>
    %168 = math.exp %167 : vector<8x128xf32>
    %cst_47 = arith.constant 1.000000e+00 : f32
    %169 = vector.broadcast %cst_47 : f32 to vector<8x128xf32>
    %170 = arith.addf %169, %168 : vector<8x128xf32>
    %171 = tpu.reciprocal %170 {approx = true} : vector<8x128xf32> -> vector<8x128xf32>
    %172 = math.tanh %165 : vector<8x128xf32>
    %173 = vector.extract_strided_slice %171 {offsets = [0, 0], sizes = [8, 32], strides = [1, 1]} : vector<8x128xf32> to vector<8x32xf32>
    %174 = vector.extract_strided_slice %171 {offsets = [0, 32], sizes = [8, 32], strides = [1, 1]} : vector<8x128xf32> to vector<8x32xf32>
    %175 = vector.extract_strided_slice %172 {offsets = [0, 64], sizes = [8, 32], strides = [1, 1]} : vector<8x128xf32> to vector<8x32xf32>
    %176 = vector.extract_strided_slice %171 {offsets = [0, 96], sizes = [8, 32], strides = [1, 1]} : vector<8x128xf32> to vector<8x32xf32>
    %177 = arith.mulf %174, %153 : vector<8x32xf32>
    %178 = arith.mulf %173, %175 : vector<8x32xf32>
    %179 = arith.addf %177, %178 : vector<8x32xf32>
    %180 = math.tanh %179 : vector<8x32xf32>
    %181 = arith.mulf %176, %180 : vector<8x32xf32>
    %182 = arith.index_cast %159 : i32 to index
    %c0_48 = arith.constant 0 : index
    %183 = vector.load %arg10[%182, %c0_48] : memref<64x32xf32, #tpu.memory_space<vmem>>, vector<8x32xf32>
    tpu.vector_store %arg10[%182, %c0_48], %181 {strides = array<i32>} : memref<64x32xf32, #tpu.memory_space<vmem>>, vector<8x32xf32>,
    %c7_i32 = arith.constant 7 : i32
    %c8_i32_49 = arith.constant 8 : i32
    %184 = arith.muli %c7_i32, %c8_i32_49 : i32
    %185 = tpu.assume_multiple %184, 8 : i32
    %c0_50 = arith.constant 0 : index
    %186 = arith.index_cast %185 : i32 to index
    %c0_51 = arith.constant 0 : index
    %187 = vector.load %arg1[%c0_50, %186, %c0_51] : memref<1x64x128xf32, #tpu.memory_space<vmem>>, vector<1x8x128xf32>
    %188 = vector.shape_cast %187 : vector<1x8x128xf32> to vector<8x128xf32>
    %189 = arith.truncf %181 : vector<8x32xf32> to vector<8x32xbf16>
    %cst_52 = arith.constant dense<0.000000e+00> : vector<8x128xf32>
    %190 = tpu.matmul %189, %1, %cst_52 {dimension_numbers = #tpu.dot_dimension_numbers<[1], [0], [0], [1], [0, 0, 1, 1], [], []>} : vector<8x32xbf16>, vector<32x128xbf16>, vector<8x128xf32> -> vector<8x128xf32>
    %191 = arith.addf %188, %190 : vector<8x128xf32>
    %cst_53 = arith.constant 0.000000e+00 : f32
    %192 = vector.broadcast %cst_53 : f32 to vector<8x128xf32>
    %193 = arith.subf %192, %191 : vector<8x128xf32>
    %194 = math.exp %193 : vector<8x128xf32>
    %cst_54 = arith.constant 1.000000e+00 : f32
    %195 = vector.broadcast %cst_54 : f32 to vector<8x128xf32>
    %196 = arith.addf %195, %194 : vector<8x128xf32>
    %197 = tpu.reciprocal %196 {approx = true} : vector<8x128xf32> -> vector<8x128xf32>
    %198 = math.tanh %191 : vector<8x128xf32>
    %199 = vector.extract_strided_slice %197 {offsets = [0, 0], sizes = [8, 32], strides = [1, 1]} : vector<8x128xf32> to vector<8x32xf32>
    %200 = vector.extract_strided_slice %197 {offsets = [0, 32], sizes = [8, 32], strides = [1, 1]} : vector<8x128xf32> to vector<8x32xf32>
    %201 = vector.extract_strided_slice %198 {offsets = [0, 64], sizes = [8, 32], strides = [1, 1]} : vector<8x128xf32> to vector<8x32xf32>
    %202 = vector.extract_strided_slice %197 {offsets = [0, 96], sizes = [8, 32], strides = [1, 1]} : vector<8x128xf32> to vector<8x32xf32>
    %203 = arith.mulf %200, %179 : vector<8x32xf32>
    %204 = arith.mulf %199, %201 : vector<8x32xf32>
    %205 = arith.addf %203, %204 : vector<8x32xf32>
    %206 = math.tanh %205 : vector<8x32xf32>
    %207 = arith.mulf %202, %206 : vector<8x32xf32>
    %208 = arith.index_cast %185 : i32 to index
    %c0_55 = arith.constant 0 : index
    %209 = vector.load %arg10[%208, %c0_55] : memref<64x32xf32, #tpu.memory_space<vmem>>, vector<8x32xf32>
    tpu.vector_store %arg10[%208, %c0_55], %207 {strides = array<i32>} : memref<64x32xf32, #tpu.memory_space<vmem>>, vector<8x32xf32>,
    %c8_i32_56 = arith.constant 8 : i32
    %c0_57 = arith.constant 0 : index
    %c0_58 = arith.constant 0 : index
    %210 = vector.load %arg4[%c0_57, %c0_58] : memref<32x128xbf16, #tpu.memory_space<vmem>>, vector<32x128xbf16>
    %c0_59 = arith.constant 0 : index
    %c0_60 = arith.constant 0 : index
    %211 = vector.load %arg10[%c0_59, %c0_60] : memref<64x32xf32, #tpu.memory_space<vmem>>, vector<64x32xf32>
    %212 = arith.truncf %211 : vector<64x32xf32> to vector<64x32xbf16>
    %c0_61 = arith.constant 0 : index
    %c0_62 = arith.constant 0 : index
    %213 = vector.load %arg3[%c0_61, %c0_62] : memref<32x128xbf16, #tpu.memory_space<vmem>>, vector<32x128xbf16>
    %cst_63 = arith.constant dense<0.000000e+00> : vector<64x128xf32>
    %214 = tpu.matmul %212, %213, %cst_63 {dimension_numbers = #tpu.dot_dimension_numbers<[1], [0], [0], [1], [0, 0, 1, 1], [], []>} : vector<64x32xbf16>, vector<32x128xbf16>, vector<64x128xf32> -> vector<64x128xf32>
    %c0_64 = arith.constant 0 : index
    %c0_65 = arith.constant 0 : index
    %215 = vector.load %arg5[%c0_64, %c0_65] : memref<1x128xf32, #tpu.memory_space<vmem>>, vector<1x128xf32>
    %216 = vector.broadcast %215 : vector<1x128xf32> to vector<64x128xf32>
    %217 = arith.addf %214, %216 : vector<64x128xf32>
    %c0_66 = arith.constant 0 : index
    %c0_67 = arith.constant 0 : index
    %218 = vector.load %arg9[%c0_66, %c0_67] : memref<64x128xf32, #tpu.memory_space<vmem>>, vector<64x128xf32>
    tpu.vector_store %arg9[%c0_66, %c0_67], %217 {strides = array<i32>} : memref<64x128xf32, #tpu.memory_space<vmem>>, vector<64x128xf32>,
    %c0_i32_68 = arith.constant 0 : i32
    %c8_i32_69 = arith.constant 8 : i32
    %219 = arith.muli %c0_i32_68, %c8_i32_69 : i32
    %220 = tpu.assume_multiple %219, 8 : i32
    %221 = arith.index_cast %220 : i32 to index
    %c0_70 = arith.constant 0 : index
    %222 = vector.load %arg9[%221, %c0_70] : memref<64x128xf32, #tpu.memory_space<vmem>>, vector<8x128xf32>
    %223 = arith.truncf %0 : vector<8x32xf32> to vector<8x32xbf16>
    %cst_71 = arith.constant dense<0.000000e+00> : vector<8x128xf32>
    %224 = tpu.matmul %223, %210, %cst_71 {dimension_numbers = #tpu.dot_dimension_numbers<[1], [0], [0], [1], [0, 0, 1, 1], [], []>} : vector<8x32xbf16>, vector<32x128xbf16>, vector<8x128xf32> -> vector<8x128xf32>
    %225 = arith.addf %222, %224 : vector<8x128xf32>
    %cst_72 = arith.constant 0.000000e+00 : f32
    %226 = vector.broadcast %cst_72 : f32 to vector<8x128xf32>
    %227 = arith.subf %226, %225 : vector<8x128xf32>
    %228 = math.exp %227 : vector<8x128xf32>
    %cst_73 = arith.constant 1.000000e+00 : f32
    %229 = vector.broadcast %cst_73 : f32 to vector<8x128xf32>
    %230 = arith.addf %229, %228 : vector<8x128xf32>
    %231 = tpu.reciprocal %230 {approx = true} : vector<8x128xf32> -> vector<8x128xf32>
    %232 = math.tanh %225 : vector<8x128xf32>
    %233 = vector.extract_strided_slice %231 {offsets = [0, 0], sizes = [8, 32], strides = [1, 1]} : vector<8x128xf32> to vector<8x32xf32>
    %234 = vector.extract_strided_slice %231 {offsets = [0, 32], sizes = [8, 32], strides = [1, 1]} : vector<8x128xf32> to vector<8x32xf32>
    %235 = vector.extract_strided_slice %232 {offsets = [0, 64], sizes = [8, 32], strides = [1, 1]} : vector<8x128xf32> to vector<8x32xf32>
    %236 = vector.extract_strided_slice %231 {offsets = [0, 96], sizes = [8, 32], strides = [1, 1]} : vector<8x128xf32> to vector<8x32xf32>
    %237 = arith.mulf %234, %0 : vector<8x32xf32>
    %238 = arith.mulf %233, %235 : vector<8x32xf32>
    %239 = arith.addf %237, %238 : vector<8x32xf32>
    %240 = math.tanh %239 : vector<8x32xf32>
    %241 = arith.mulf %236, %240 : vector<8x32xf32>
    %242 = arith.addf %0, %241 : vector<8x32xf32>
    %c1_i32_74 = arith.constant 1 : i32
    %c8_i32_75 = arith.constant 8 : i32
    %243 = arith.muli %c1_i32_74, %c8_i32_75 : i32
    %244 = tpu.assume_multiple %243, 8 : i32
    %245 = arith.index_cast %244 : i32 to index
    %c0_76 = arith.constant 0 : index
    %246 = vector.load %arg9[%245, %c0_76] : memref<64x128xf32, #tpu.memory_space<vmem>>, vector<8x128xf32>
    %247 = arith.truncf %241 : vector<8x32xf32> to vector<8x32xbf16>
    %cst_77 = arith.constant dense<0.000000e+00> : vector<8x128xf32>
    %248 = tpu.matmul %247, %210, %cst_77 {dimension_numbers = #tpu.dot_dimension_numbers<[1], [0], [0], [1], [0, 0, 1, 1], [], []>} : vector<8x32xbf16>, vector<32x128xbf16>, vector<8x128xf32> -> vector<8x128xf32>
    %249 = arith.addf %246, %248 : vector<8x128xf32>
    %cst_78 = arith.constant 0.000000e+00 : f32
    %250 = vector.broadcast %cst_78 : f32 to vector<8x128xf32>
    %251 = arith.subf %250, %249 : vector<8x128xf32>
    %252 = math.exp %251 : vector<8x128xf32>
    %cst_79 = arith.constant 1.000000e+00 : f32
    %253 = vector.broadcast %cst_79 : f32 to vector<8x128xf32>
    %254 = arith.addf %253, %252 : vector<8x128xf32>
    %255 = tpu.reciprocal %254 {approx = true} : vector<8x128xf32> -> vector<8x128xf32>
    %256 = math.tanh %249 : vector<8x128xf32>
    %257 = vector.extract_strided_slice %255 {offsets = [0, 0], sizes = [8, 32], strides = [1, 1]} : vector<8x128xf32> to vector<8x32xf32>
    %258 = vector.extract_strided_slice %255 {offsets = [0, 32], sizes = [8, 32], strides = [1, 1]} : vector<8x128xf32> to vector<8x32xf32>
    %259 = vector.extract_strided_slice %256 {offsets = [0, 64], sizes = [8, 32], strides = [1, 1]} : vector<8x128xf32> to vector<8x32xf32>
    %260 = vector.extract_strided_slice %255 {offsets = [0, 96], sizes = [8, 32], strides = [1, 1]} : vector<8x128xf32> to vector<8x32xf32>
    %261 = arith.mulf %258, %239 : vector<8x32xf32>
    %262 = arith.mulf %257, %259 : vector<8x32xf32>
    %263 = arith.addf %261, %262 : vector<8x32xf32>
    %264 = math.tanh %263 : vector<8x32xf32>
    %265 = arith.mulf %260, %264 : vector<8x32xf32>
    %266 = arith.addf %242, %265 : vector<8x32xf32>
    %c2_i32_80 = arith.constant 2 : i32
    %c8_i32_81 = arith.constant 8 : i32
    %267 = arith.muli %c2_i32_80, %c8_i32_81 : i32
    %268 = tpu.assume_multiple %267, 8 : i32
    %269 = arith.index_cast %268 : i32 to index
    %c0_82 = arith.constant 0 : index
    %270 = vector.load %arg9[%269, %c0_82] : memref<64x128xf32, #tpu.memory_space<vmem>>, vector<8x128xf32>
    %271 = arith.truncf %265 : vector<8x32xf32> to vector<8x32xbf16>
    %cst_83 = arith.constant dense<0.000000e+00> : vector<8x128xf32>
    %272 = tpu.matmul %271, %210, %cst_83 {dimension_numbers = #tpu.dot_dimension_numbers<[1], [0], [0], [1], [0, 0, 1, 1], [], []>} : vector<8x32xbf16>, vector<32x128xbf16>, vector<8x128xf32> -> vector<8x128xf32>
    %273 = arith.addf %270, %272 : vector<8x128xf32>
    %cst_84 = arith.constant 0.000000e+00 : f32
    %274 = vector.broadcast %cst_84 : f32 to vector<8x128xf32>
    %275 = arith.subf %274, %273 : vector<8x128xf32>
    %276 = math.exp %275 : vector<8x128xf32>
    %cst_85 = arith.constant 1.000000e+00 : f32
    %277 = vector.broadcast %cst_85 : f32 to vector<8x128xf32>
    %278 = arith.addf %277, %276 : vector<8x128xf32>
    %279 = tpu.reciprocal %278 {approx = true} : vector<8x128xf32> -> vector<8x128xf32>
    %280 = math.tanh %273 : vector<8x128xf32>
    %281 = vector.extract_strided_slice %279 {offsets = [0, 0], sizes = [8, 32], strides = [1, 1]} : vector<8x128xf32> to vector<8x32xf32>
    %282 = vector.extract_strided_slice %279 {offsets = [0, 32], sizes = [8, 32], strides = [1, 1]} : vector<8x128xf32> to vector<8x32xf32>
    %283 = vector.extract_strided_slice %280 {offsets = [0, 64], sizes = [8, 32], strides = [1, 1]} : vector<8x128xf32> to vector<8x32xf32>
    %284 = vector.extract_strided_slice %279 {offsets = [0, 96], sizes = [8, 32], strides = [1, 1]} : vector<8x128xf32> to vector<8x32xf32>
    %285 = arith.mulf %282, %263 : vector<8x32xf32>
    %286 = arith.mulf %281, %283 : vector<8x32xf32>
    %287 = arith.addf %285, %286 : vector<8x32xf32>
    %288 = math.tanh %287 : vector<8x32xf32>
    %289 = arith.mulf %284, %288 : vector<8x32xf32>
    %290 = arith.addf %266, %289 : vector<8x32xf32>
    %c3_i32_86 = arith.constant 3 : i32
    %c8_i32_87 = arith.constant 8 : i32
    %291 = arith.muli %c3_i32_86, %c8_i32_87 : i32
    %292 = tpu.assume_multiple %291, 8 : i32
    %293 = arith.index_cast %292 : i32 to index
    %c0_88 = arith.constant 0 : index
    %294 = vector.load %arg9[%293, %c0_88] : memref<64x128xf32, #tpu.memory_space<vmem>>, vector<8x128xf32>
    %295 = arith.truncf %289 : vector<8x32xf32> to vector<8x32xbf16>
    %cst_89 = arith.constant dense<0.000000e+00> : vector<8x128xf32>
    %296 = tpu.matmul %295, %210, %cst_89 {dimension_numbers = #tpu.dot_dimension_numbers<[1], [0], [0], [1], [0, 0, 1, 1], [], []>} : vector<8x32xbf16>, vector<32x128xbf16>, vector<8x128xf32> -> vector<8x128xf32>
    %297 = arith.addf %294, %296 : vector<8x128xf32>
    %cst_90 = arith.constant 0.000000e+00 : f32
    %298 = vector.broadcast %cst_90 : f32 to vector<8x128xf32>
    %299 = arith.subf %298, %297 : vector<8x128xf32>
    %300 = math.exp %299 : vector<8x128xf32>
    %cst_91 = arith.constant 1.000000e+00 : f32
    %301 = vector.broadcast %cst_91 : f32 to vector<8x128xf32>
    %302 = arith.addf %301, %300 : vector<8x128xf32>
    %303 = tpu.reciprocal %302 {approx = true} : vector<8x128xf32> -> vector<8x128xf32>
    %304 = math.tanh %297 : vector<8x128xf32>
    %305 = vector.extract_strided_slice %303 {offsets = [0, 0], sizes = [8, 32], strides = [1, 1]} : vector<8x128xf32> to vector<8x32xf32>
    %306 = vector.extract_strided_slice %303 {offsets = [0, 32], sizes = [8, 32], strides = [1, 1]} : vector<8x128xf32> to vector<8x32xf32>
    %307 = vector.extract_strided_slice %304 {offsets = [0, 64], sizes = [8, 32], strides = [1, 1]} : vector<8x128xf32> to vector<8x32xf32>
    %308 = vector.extract_strided_slice %303 {offsets = [0, 96], sizes = [8, 32], strides = [1, 1]} : vector<8x128xf32> to vector<8x32xf32>
    %309 = arith.mulf %306, %287 : vector<8x32xf32>
    %310 = arith.mulf %305, %307 : vector<8x32xf32>
    %311 = arith.addf %309, %310 : vector<8x32xf32>
    %312 = math.tanh %311 : vector<8x32xf32>
    %313 = arith.mulf %308, %312 : vector<8x32xf32>
    %314 = arith.addf %290, %313 : vector<8x32xf32>
    %c4_i32_92 = arith.constant 4 : i32
    %c8_i32_93 = arith.constant 8 : i32
    %315 = arith.muli %c4_i32_92, %c8_i32_93 : i32
    %316 = tpu.assume_multiple %315, 8 : i32
    %317 = arith.index_cast %316 : i32 to index
    %c0_94 = arith.constant 0 : index
    %318 = vector.load %arg9[%317, %c0_94] : memref<64x128xf32, #tpu.memory_space<vmem>>, vector<8x128xf32>
    %319 = arith.truncf %313 : vector<8x32xf32> to vector<8x32xbf16>
    %cst_95 = arith.constant dense<0.000000e+00> : vector<8x128xf32>
    %320 = tpu.matmul %319, %210, %cst_95 {dimension_numbers = #tpu.dot_dimension_numbers<[1], [0], [0], [1], [0, 0, 1, 1], [], []>} : vector<8x32xbf16>, vector<32x128xbf16>, vector<8x128xf32> -> vector<8x128xf32>
    %321 = arith.addf %318, %320 : vector<8x128xf32>
    %cst_96 = arith.constant 0.000000e+00 : f32
    %322 = vector.broadcast %cst_96 : f32 to vector<8x128xf32>
    %323 = arith.subf %322, %321 : vector<8x128xf32>
    %324 = math.exp %323 : vector<8x128xf32>
    %cst_97 = arith.constant 1.000000e+00 : f32
    %325 = vector.broadcast %cst_97 : f32 to vector<8x128xf32>
    %326 = arith.addf %325, %324 : vector<8x128xf32>
    %327 = tpu.reciprocal %326 {approx = true} : vector<8x128xf32> -> vector<8x128xf32>
    %328 = math.tanh %321 : vector<8x128xf32>
    %329 = vector.extract_strided_slice %327 {offsets = [0, 0], sizes = [8, 32], strides = [1, 1]} : vector<8x128xf32> to vector<8x32xf32>
    %330 = vector.extract_strided_slice %327 {offsets = [0, 32], sizes = [8, 32], strides = [1, 1]} : vector<8x128xf32> to vector<8x32xf32>
    %331 = vector.extract_strided_slice %328 {offsets = [0, 64], sizes = [8, 32], strides = [1, 1]} : vector<8x128xf32> to vector<8x32xf32>
    %332 = vector.extract_strided_slice %327 {offsets = [0, 96], sizes = [8, 32], strides = [1, 1]} : vector<8x128xf32> to vector<8x32xf32>
    %333 = arith.mulf %330, %311 : vector<8x32xf32>
    %334 = arith.mulf %329, %331 : vector<8x32xf32>
    %335 = arith.addf %333, %334 : vector<8x32xf32>
    %336 = math.tanh %335 : vector<8x32xf32>
    %337 = arith.mulf %332, %336 : vector<8x32xf32>
    %338 = arith.addf %314, %337 : vector<8x32xf32>
    %c5_i32_98 = arith.constant 5 : i32
    %c8_i32_99 = arith.constant 8 : i32
    %339 = arith.muli %c5_i32_98, %c8_i32_99 : i32
    %340 = tpu.assume_multiple %339, 8 : i32
    %341 = arith.index_cast %340 : i32 to index
    %c0_100 = arith.constant 0 : index
    %342 = vector.load %arg9[%341, %c0_100] : memref<64x128xf32, #tpu.memory_space<vmem>>, vector<8x128xf32>
    %343 = arith.truncf %337 : vector<8x32xf32> to vector<8x32xbf16>
    %cst_101 = arith.constant dense<0.000000e+00> : vector<8x128xf32>
    %344 = tpu.matmul %343, %210, %cst_101 {dimension_numbers = #tpu.dot_dimension_numbers<[1], [0], [0], [1], [0, 0, 1, 1], [], []>} : vector<8x32xbf16>, vector<32x128xbf16>, vector<8x128xf32> -> vector<8x128xf32>
    %345 = arith.addf %342, %344 : vector<8x128xf32>
    %cst_102 = arith.constant 0.000000e+00 : f32
    %346 = vector.broadcast %cst_102 : f32 to vector<8x128xf32>
    %347 = arith.subf %346, %345 : vector<8x128xf32>
    %348 = math.exp %347 : vector<8x128xf32>
    %cst_103 = arith.constant 1.000000e+00 : f32
    %349 = vector.broadcast %cst_103 : f32 to vector<8x128xf32>
    %350 = arith.addf %349, %348 : vector<8x128xf32>
    %351 = tpu.reciprocal %350 {approx = true} : vector<8x128xf32> -> vector<8x128xf32>
    %352 = math.tanh %345 : vector<8x128xf32>
    %353 = vector.extract_strided_slice %351 {offsets = [0, 0], sizes = [8, 32], strides = [1, 1]} : vector<8x128xf32> to vector<8x32xf32>
    %354 = vector.extract_strided_slice %351 {offsets = [0, 32], sizes = [8, 32], strides = [1, 1]} : vector<8x128xf32> to vector<8x32xf32>
    %355 = vector.extract_strided_slice %352 {offsets = [0, 64], sizes = [8, 32], strides = [1, 1]} : vector<8x128xf32> to vector<8x32xf32>
    %356 = vector.extract_strided_slice %351 {offsets = [0, 96], sizes = [8, 32], strides = [1, 1]} : vector<8x128xf32> to vector<8x32xf32>
    %357 = arith.mulf %354, %335 : vector<8x32xf32>
    %358 = arith.mulf %353, %355 : vector<8x32xf32>
    %359 = arith.addf %357, %358 : vector<8x32xf32>
    %360 = math.tanh %359 : vector<8x32xf32>
    %361 = arith.mulf %356, %360 : vector<8x32xf32>
    %362 = arith.addf %338, %361 : vector<8x32xf32>
    %c6_i32_104 = arith.constant 6 : i32
    %c8_i32_105 = arith.constant 8 : i32
    %363 = arith.muli %c6_i32_104, %c8_i32_105 : i32
    %364 = tpu.assume_multiple %363, 8 : i32
    %365 = arith.index_cast %364 : i32 to index
    %c0_106 = arith.constant 0 : index
    %366 = vector.load %arg9[%365, %c0_106] : memref<64x128xf32, #tpu.memory_space<vmem>>, vector<8x128xf32>
    %367 = arith.truncf %361 : vector<8x32xf32> to vector<8x32xbf16>
    %cst_107 = arith.constant dense<0.000000e+00> : vector<8x128xf32>
    %368 = tpu.matmul %367, %210, %cst_107 {dimension_numbers = #tpu.dot_dimension_numbers<[1], [0], [0], [1], [0, 0, 1, 1], [], []>} : vector<8x32xbf16>, vector<32x128xbf16>, vector<8x128xf32> -> vector<8x128xf32>
    %369 = arith.addf %366, %368 : vector<8x128xf32>
    %cst_108 = arith.constant 0.000000e+00 : f32
    %370 = vector.broadcast %cst_108 : f32 to vector<8x128xf32>
    %371 = arith.subf %370, %369 : vector<8x128xf32>
    %372 = math.exp %371 : vector<8x128xf32>
    %cst_109 = arith.constant 1.000000e+00 : f32
    %373 = vector.broadcast %cst_109 : f32 to vector<8x128xf32>
    %374 = arith.addf %373, %372 : vector<8x128xf32>
    %375 = tpu.reciprocal %374 {approx = true} : vector<8x128xf32> -> vector<8x128xf32>
    %376 = math.tanh %369 : vector<8x128xf32>
    %377 = vector.extract_strided_slice %375 {offsets = [0, 0], sizes = [8, 32], strides = [1, 1]} : vector<8x128xf32> to vector<8x32xf32>
    %378 = vector.extract_strided_slice %375 {offsets = [0, 32], sizes = [8, 32], strides = [1, 1]} : vector<8x128xf32> to vector<8x32xf32>
    %379 = vector.extract_strided_slice %376 {offsets = [0, 64], sizes = [8, 32], strides = [1, 1]} : vector<8x128xf32> to vector<8x32xf32>
    %380 = vector.extract_strided_slice %375 {offsets = [0, 96], sizes = [8, 32], strides = [1, 1]} : vector<8x128xf32> to vector<8x32xf32>
    %381 = arith.mulf %378, %359 : vector<8x32xf32>
    %382 = arith.mulf %377, %379 : vector<8x32xf32>
    %383 = arith.addf %381, %382 : vector<8x32xf32>
    %384 = math.tanh %383 : vector<8x32xf32>
    %385 = arith.mulf %380, %384 : vector<8x32xf32>
    %386 = arith.addf %362, %385 : vector<8x32xf32>
    %c7_i32_110 = arith.constant 7 : i32
    %c8_i32_111 = arith.constant 8 : i32
    %387 = arith.muli %c7_i32_110, %c8_i32_111 : i32
    %388 = tpu.assume_multiple %387, 8 : i32
    %389 = arith.index_cast %388 : i32 to index
    %c0_112 = arith.constant 0 : index
    %390 = vector.load %arg9[%389, %c0_112] : memref<64x128xf32, #tpu.memory_space<vmem>>, vector<8x128xf32>
    %391 = arith.truncf %385 : vector<8x32xf32> to vector<8x32xbf16>
    %cst_113 = arith.constant dense<0.000000e+00> : vector<8x128xf32>
    %392 = tpu.matmul %391, %210, %cst_113 {dimension_numbers = #tpu.dot_dimension_numbers<[1], [0], [0], [1], [0, 0, 1, 1], [], []>} : vector<8x32xbf16>, vector<32x128xbf16>, vector<8x128xf32> -> vector<8x128xf32>
    %393 = arith.addf %390, %392 : vector<8x128xf32>
    %cst_114 = arith.constant 0.000000e+00 : f32
    %394 = vector.broadcast %cst_114 : f32 to vector<8x128xf32>
    %395 = arith.subf %394, %393 : vector<8x128xf32>
    %396 = math.exp %395 : vector<8x128xf32>
    %cst_115 = arith.constant 1.000000e+00 : f32
    %397 = vector.broadcast %cst_115 : f32 to vector<8x128xf32>
    %398 = arith.addf %397, %396 : vector<8x128xf32>
    %399 = tpu.reciprocal %398 {approx = true} : vector<8x128xf32> -> vector<8x128xf32>
    %400 = math.tanh %393 : vector<8x128xf32>
    %401 = vector.extract_strided_slice %399 {offsets = [0, 0], sizes = [8, 32], strides = [1, 1]} : vector<8x128xf32> to vector<8x32xf32>
    %402 = vector.extract_strided_slice %399 {offsets = [0, 32], sizes = [8, 32], strides = [1, 1]} : vector<8x128xf32> to vector<8x32xf32>
    %403 = vector.extract_strided_slice %400 {offsets = [0, 64], sizes = [8, 32], strides = [1, 1]} : vector<8x128xf32> to vector<8x32xf32>
    %404 = vector.extract_strided_slice %399 {offsets = [0, 96], sizes = [8, 32], strides = [1, 1]} : vector<8x128xf32> to vector<8x32xf32>
    %405 = arith.mulf %402, %383 : vector<8x32xf32>
    %406 = arith.mulf %401, %403 : vector<8x32xf32>
    %407 = arith.addf %405, %406 : vector<8x32xf32>
    %408 = math.tanh %407 : vector<8x32xf32>
    %409 = arith.mulf %404, %408 : vector<8x32xf32>
    %410 = arith.addf %386, %409 : vector<8x32xf32>
    %c8_i32_116 = arith.constant 8 : i32
    %cst_117 = arith.constant 1.250000e-01 : f32
    %411 = vector.broadcast %cst_117 : f32 to vector<8x32xf32>
    %412 = arith.mulf %410, %411 : vector<8x32xf32>
    %c0_118 = arith.constant 0 : index
    %c0_119 = arith.constant 0 : index
    %413 = vector.load %arg6[%c0_118, %c0_119] : memref<32x128xf32, #tpu.memory_space<vmem>>, vector<32x128xf32>
    %cst_120 = arith.constant dense<0.000000e+00> : vector<8x128xf32>
    %414 = tpu.matmul %412, %413, %cst_120 {dimension_numbers = #tpu.dot_dimension_numbers<[1], [0], [0], [1], [0, 0, 1, 1], [], []>} : vector<8x32xf32>, vector<32x128xf32>, vector<8x128xf32> -> vector<8x128xf32>
    %c0_121 = arith.constant 0 : index
    %c0_122 = arith.constant 0 : index
    %415 = vector.load %arg7[%c0_121, %c0_122] : memref<1x128xf32, #tpu.memory_space<vmem>>, vector<1x128xf32>
    %416 = vector.broadcast %415 : vector<1x128xf32> to vector<8x128xf32>
    %417 = arith.addf %414, %416 : vector<8x128xf32>
    %c0_123 = arith.constant 0 : index
    %c0_124 = arith.constant 0 : index
    %c0_125 = arith.constant 0 : index
    %418 = vector.load %arg8[%c0_123, %c0_124, %c0_125] : memref<1x8x128xf32, #tpu.memory_space<vmem>>, vector<1x8x128xf32>
    %419 = vector.shape_cast %418 : vector<1x8x128xf32> to vector<8x128xf32>
    %420 = vector.shape_cast %417 : vector<8x128xf32> to vector<1x8x128xf32>
    tpu.vector_store %arg8[%c0_123, %c0_124, %c0_125], %420 {strides = array<i32>} : memref<1x8x128xf32, #tpu.memory_space<vmem>>, vector<1x8x128xf32>,
    return
  }
  func.func @transform_0(%arg0: i32) -> (i32, i32, i32) {
    %c0_i32 = arith.constant 0 : i32
    %c0_i32_0 = arith.constant 0 : i32
    %c0_i32_1 = arith.constant 0 : i32
    return %arg0, %c0_i32, %c0_i32_0 : i32, i32, i32
  }
  func.func @transform_1(%arg0: i32) -> (i32, i32) {
    %c0_i32 = arith.constant 0 : i32
    %c0_i32_0 = arith.constant 0 : i32
    %c0_i32_1 = arith.constant 0 : i32
    return %c0_i32, %c0_i32_0 : i32, i32
  }
  func.func @transform_2(%arg0: i32) -> (i32, i32) {
    %c0_i32 = arith.constant 0 : i32
    %c0_i32_0 = arith.constant 0 : i32
    %c0_i32_1 = arith.constant 0 : i32
    return %c0_i32, %c0_i32_0 : i32, i32
  }
  func.func @transform_3(%arg0: i32) -> (i32, i32) {
    %c0_i32 = arith.constant 0 : i32
    %c0_i32_0 = arith.constant 0 : i32
    %c0_i32_1 = arith.constant 0 : i32
    return %c0_i32, %c0_i32_0 : i32, i32
  }
  func.func @transform_4(%arg0: i32) -> (i32, i32) {
    %c0_i32 = arith.constant 0 : i32
    %c0_i32_0 = arith.constant 0 : i32
    %c0_i32_1 = arith.constant 0 : i32
    return %c0_i32, %c0_i32_0 : i32, i32
  }
  func.func @transform_5(%arg0: i32) -> (i32, i32) {
    %c0_i32 = arith.constant 0 : i32
    %c0_i32_0 = arith.constant 0 : i32
    %c0_i32_1 = arith.constant 0 : i32
    return %c0_i32, %c0_i32_0 : i32, i32
  }
  func.func @transform_6(%arg0: i32) -> (i32, i32) {
    %c0_i32 = arith.constant 0 : i32
    %c0_i32_0 = arith.constant 0 : i32
    %c0_i32_1 = arith.constant 0 : i32
    return %c0_i32, %c0_i32_0 : i32, i32
  }
  func.func @transform_7(%arg0: i32) -> (i32, i32, i32) {
    %c0_i32 = arith.constant 0 : i32
    %c0_i32_0 = arith.constant 0 : i32
    %c0_i32_1 = arith.constant 0 : i32
    return %arg0, %c0_i32, %c0_i32_0 : i32, i32, i32
  }
}

</mosaic_0001>

<bundles_post_ra>
// kernel: tpu_custom_call.1
= control target key start
LH: loop header
LB: loop body
LE: loop exit
PB: predicated region body
PF: predicated region fallthrough
CT: control target
= control target key end

     0   :  { %12 = vsyncpa [#allocation5], 0  ;;  %s1662_s0 = inlined_call_operand.hbm [shape: f32[1,64,128], index: 0, kind: input, shape index: {}]   ;;  %s1663_s1 = inlined_call_operand.hbm [shape: bf16[32,128], index: 1, kind: input, shape index: {}]   ;;  %s1664_s2 = inlined_call_operand.hbm [shape: bf16[32,128], index: 2, kind: input, shape index: {}]   ;;  %s1665_s3 = inlined_call_operand.hbm [shape: bf16[32,128], index: 3, kind: input, shape index: {}]   ;;  %s1666_s4 = inlined_call_operand.vmem [shape: f32[1,128], index: 4, kind: input, shape index: {}]   ;;  %s1667_s5 = inlined_call_operand.hbm [shape: f32[32,128], index: 5, kind: input, shape index: {}]   ;;  %s1668_s6 = inlined_call_operand.vmem [shape: f32[1,128], index: 6, kind: input, shape index: {}]   ;;  %s1669_s7 = inlined_call_operand.hbm [shape: f32[1,8,128], index: 7, kind: output, shape index: {}]  }
   0x1   :  { %13 = vsyncpa [#allocation8], 0 }
   0x2   :  { %14 = vsyncpa [#allocation11], 0  ;;  %s33_s26 = sshll.u32 %s1663_s1, 4  ;;  %s34_s26 = int_to_ptr.hbm [resolvable:$true] %s33_s26 }
   0x3   :  { %15 = vsyncpa [#allocation6], 0  ;;  %s1395_s27 = smov [#allocation7]   ;;  %s59_s8 = sshll.u32 %s1665_s3, 4  ;;  %s60_s8 = int_to_ptr.hbm [resolvable:$true] %s59_s8 }
   0x4   :  { %s35_s28 = sshll.u32 %s1395_s27, 4  ;;  %s1396_s9 = smov 64   ;;  %s36_s28 = int_to_ptr.vmem [resolvable:$true] %s35_s28 }
   0x5   :  { %s1397_s10 = smov 4   ;;  %s1398_s11 = smov [#allocation10]  }
   0x6   :  { %41 = dma.hbm_to_vmem [thread:$0]  %s34_s26, 256, %s36_s28, [#allocation8], %s1396_s9, %s1396_s9, %s1397_s10  }
   0x7   :  { %s61_s12 = sshll.u32 %s1398_s11, 4  ;;  %s20_s1 = sshll.u32 %s1662_s0, 4  ;;  %s62_s12 = int_to_ptr.vmem [resolvable:$true] %s61_s12  ;;  %s21_s1 = int_to_ptr.hbm [resolvable:$true] %s20_s1 }
   0x8   :  { %67 = dma.hbm_to_vmem [thread:$0]  %s60_s8, 256, %s62_s12, [#allocation11], %s1396_s9, %s1396_s9, %s1397_s10  }
   0x9   :  { %s1399_s15 = smov [#allocation4]   ;;  %s46_s18 = sshll.u32 %s1664_s2, 4  ;;  %s47_s18 = int_to_ptr.hbm [resolvable:$true] %s46_s18 }
   0xa   :  { %s22_s16 = sshll.u32 %s1399_s15, 4  ;;  %s1400_s19 = smov 128   ;;  %s23_s16 = int_to_ptr.vmem [resolvable:$true] %s22_s16 }
   0xb   :  { %s1401_s20 = smov 8   ;;  %s1402_s21 = smov [#allocation9]  }
   0xc   :  { %28 = dma.hbm_to_vmem [thread:$0]  %s21_s1, 1024, %s23_s16, [#allocation5], %s1400_s19, %s1400_s19, %s1401_s20  }
   0xd   :  { %s48_s22 = sshll.u32 %s1402_s21, 4  ;;  %s74_s24 = sshll.u32 %s1667_s5, 4  ;;  %s49_s22 = int_to_ptr.vmem [resolvable:$true] %s48_s22  ;;  %s75_s24 = int_to_ptr.hbm [resolvable:$true] %s74_s24 }
   0xe   :  { %54 = dma.hbm_to_vmem [thread:$0]  %s47_s18, 256, %s49_s22, [#allocation8], %s1396_s9, %s1396_s9, %s1397_s10  }
   0xf   :  { %s1403_s25 = smov [#allocation12]  }
  0x10   :  { %s76_s26 = sshll.u32 %s1403_s25, 4  ;;  %s77_s26 = int_to_ptr.vmem [resolvable:$true] %s76_s26 }
  0x11   :  { %82 = dma.hbm_to_vmem [thread:$0]  %s75_s24, 512, %s77_s26, [#allocation11], %s1400_s19, %s1400_s19, %s1401_s20  }
  0x12   :  { %1387 = dma.done.wait [#allocation5], 1024  }
  0x13   :  { %1388 = vsyncadd [#allocation5], 4294966272 }
  0x14   :  { %1389 = dma.done.wait [#allocation8], 512  }
  0x15   :  { %1390 = vsyncadd [#allocation8], 4294966784 }
  0x16   :  { %1391 = dma.done.wait [#allocation11], 768  }
  0x17   :  { %1392 = vsyncadd [#allocation11], 4294966528  ;;  %v1096_v0 = vld [vmem:[#allocation7 + $0x8] sm:$0xff]  ;;  %v1095_v1 = vld [vmem:[#allocation7] sm:$0xff]  ;;  %v1404_v2 = vmov 0   ;;  %s1405_s2 = smov 32  }
  0x18   :  { %133 = vmatpush.bf16.msra.mxu3 %v1096_v0  ;;  %184 = vmatpush.bf16.msra.mxu1 %v1096_v0  ;;  %v110_v3 = vld [vmem:[#allocation4] sm:$0xff]  ;;  %vm123_vm0 = vcmask 261120   ;;  %v170_v23 = vld [vmem:[#allocation4 + $0x8] sm:$0xff]  ;;  %v222_v43 = vld [vmem:[#allocation4 + $0x10] sm:$0xff]  ;;  %s1406_s29 = smov [#allocation13]   ;;  %s1040_s10 = sshll.u32 %s1669_s7, 4  ;;  %s1041_s10 = int_to_ptr.hbm [resolvable:$true] %s1040_s10 }
  0x19   :  { %236 = vmatpush.bf16.msra.mxu2 %v1096_v0  ;;  %340 = vmatpush.bf16.msra.mxu0 %v1096_v0  ;;  %v274_v63 = vld [vmem:[#allocation4 + $0x18] sm:$0xff]  ;;  %s1038_s30 = sshll.u32 %s1406_s29, 4  ;;  %s1039_s30 = int_to_ptr.vmem [resolvable:$true] %s1038_s30 }
  0x1c   :  { %134 = vmatpush.bf16.msra.mxu3 %v1095_v1  ;;  %185 = vmatpush.bf16.msra.mxu1 %v1095_v1 }
  0x1d   :  { %237 = vmatpush.bf16.msra.mxu2 %v1095_v1  ;;  %341 = vmatpush.bf16.msra.mxu0 %v1095_v1 }
  0x1f   :  { %135 = vmatmul.bf16.vlgmr.msra.gmra.mxu3 %v1404_v2 }
  0x20   :  { %288 = vmatpush.bf16.msrb.mxu3 %v1096_v0  ;;  %392 = vmatpush.bf16.msrb.mxu1 %v1096_v0 }
  0x21   :  { %444 = vmatpush.bf16.msrb.mxu2 %v1096_v0 }
  0x24   :  { %289 = vmatpush.bf16.msrb.mxu3 %v1095_v1  ;;  %393 = vmatpush.bf16.msrb.mxu1 %v1095_v1 }
  0x25   :  { %445 = vmatpush.bf16.msrb.mxu2 %v1095_v1 }
  0x28   :  { %496 = vmatpush.bf16.msra.mxu3 %v1096_v0 }
  0x2c   :  { %497 = vmatpush.bf16.msra.mxu3 %v1095_v1 }
  0xa2   :  { %v136_v4 = vpop.f32.mrf.mxu3 }
  0xa3   :  { %v140_v5 = vadd.f32 %v136_v4, %v110_v3 }
  0xa5   :  { %1115 = vtanh.f32 %v140_v5  ;;  %v141_v8 = vsub.f32 0.0, %v140_v5 }
  0xa7   :  { %v142_v9 = vmul.f32 1.442695, %v141_v8 }
  0xa9   :  { %1117 = vpow2.f32 %v142_v9 }
  0xaa   :  { %v138_v6 = vpop.f32.mrf.mxu3 }
  0xab   :  { %v1116_v7 = vpop.eup %1115 }
  0xac   :  { %149 = vrot.lane.b32.xlu0 %v1116_v7, %s1396_s9 }
  0xaf   :  { %v1118_v10 = vpop.eup %1117 }
  0xb0   :  { %v144_v11 = vadd.f32 1.0, %v1118_v10 }
  0xb2   :  { %1119 = vrcp.f32 %v144_v11 }
  0xb8   :  { %v1120_v12 = vpop.eup %1119 }
  0xb9   :  { %v147_v15 = vmul.f32 0.0, %v1120_v12 }
 0x11e   :  { %v150_v13 = vpop.permute.xlu0 %149 }
 0x11f   :  { %v152_v14 = vmul.f32 %v1120_v12, %v150_v13 }
 0x121   :  { %154 = vrot.lane.b32.xlu0 %v152_v14, %s1405_s2 }
 0x193   :  { %v155_v16 = vpop.permute.xlu0 %154 }
 0x194   :  { %v157_v17 = vadd.f32 %v155_v16, %v147_v15 }
 0x196   :  { %1121 = vtanh.f32 %v157_v17 }
 0x19c   :  { %v1122_v18 = vpop.eup %1121 }
 0x19d   :  { %160 = vrot.lane.b32.xlu1 %v1122_v18, %s1396_s9 }
 0x20f   :  { %v161_v19 = vpop.permute.xlu1 %160 }
 0x210   :  { %v1472_v20 = vmul.f32 %v1120_v12, %v161_v19 }
 0x212   :  { %v171_v21 = vpack.c.bf16 %v1472_v20, %v1472_v20 }
 0x214   :  { %173 = vrot.lane.b32.xlu1 %v171_v21, %s1405_s2  ;;  %v326_v21 = vld [vmem:[#allocation4 + $0x20] sm:$0xff] }
 0x286   :  { %v174_v22 = vpop.permute.xlu1 %173 }
 0x287   :  { %1060 = vmatmul.msk.bf16.vlgmr.msra.gmra.mxu1 %vm123_vm0, %v174_v22 }
 0x304   :  { %v187_v24 = vpop.f32.mrf.mxu1 }
 0x305   :  { %v191_v25 = vadd.f32 %v187_v24, %v170_v23 }
 0x307   :  { %1123 = vtanh.f32 %v191_v25  ;;  %v192_v28 = vsub.f32 0.0, %v191_v25 }
 0x309   :  { %v193_v29 = vmul.f32 1.442695, %v192_v28 }
 0x30b   :  { %1125 = vpow2.f32 %v193_v29 }
 0x30c   :  { %v189_v26 = vpop.f32.mrf.mxu1 }
 0x30d   :  { %v1124_v27 = vpop.eup %1123 }
 0x30e   :  { %200 = vrot.lane.b32.xlu2 %v1124_v27, %s1396_s9 }
 0x311   :  { %v1126_v30 = vpop.eup %1125 }
 0x312   :  { %v195_v31 = vadd.f32 1.0, %v1126_v30 }
 0x314   :  { %1127 = vrcp.f32 %v195_v31 }
 0x31a   :  { %v1128_v32 = vpop.eup %1127 }
 0x31b   :  { %v198_v35 = vmul.f32 %v1128_v32, %v157_v17 }
 0x368   :  { %v201_v33 = vpop.permute.xlu2 %200 }
 0x369   :  { %v203_v34 = vmul.f32 %v1128_v32, %v201_v33 }
 0x36b   :  { %205 = vrot.lane.b32.xlu2 %v203_v34, %s1405_s2 }
 0x3c5   :  { %v206_v36 = vpop.permute.xlu2 %205 }
 0x3c6   :  { %v208_v37 = vadd.f32 %v206_v36, %v198_v35 }
 0x3c8   :  { %1129 = vtanh.f32 %v208_v37 }
 0x3ce   :  { %v1130_v38 = vpop.eup %1129 }
 0x3cf   :  { %211 = vrot.lane.b32.xlu0 %v1130_v38, %s1396_s9  ;;  %v1100_v38 = vld [vmem:[#allocation9 + $0x8] sm:$0xff] }
 0x3d0   :  { %587 = vmatpush.bf16.msrb.mxu0 %v1100_v38 }
 0x441   :  { %v212_v39 = vpop.permute.xlu0 %211 }
 0x442   :  { %v1481_v40 = vmul.f32 %v1128_v32, %v212_v39  ;;  %v1099_v39 = vld [vmem:[#allocation9] sm:$0xff] }
 0x443   :  { %588 = vmatpush.bf16.msrb.mxu0 %v1099_v39 }
 0x444   :  { %v223_v41 = vpack.c.bf16 %v1481_v40, %v1481_v40 }
 0x446   :  { %225 = vrot.lane.b32.xlu1 %v223_v41, %s1405_s2 }
 0x4b8   :  { %v226_v42 = vpop.permute.xlu1 %225 }
 0x4b9   :  { %1061 = vmatmul.msk.bf16.vlgmr.msra.gmra.mxu2 %vm123_vm0, %v226_v42 }
 0x53c   :  { %v239_v44 = vpop.f32.mrf.mxu2 }
 0x53d   :  { %v243_v45 = vadd.f32 %v239_v44, %v222_v43 }
 0x53f   :  { %1131 = vtanh.f32 %v243_v45  ;;  %v244_v48 = vsub.f32 0.0, %v243_v45 }
 0x541   :  { %v245_v49 = vmul.f32 1.442695, %v244_v48 }
 0x543   :  { %1133 = vpow2.f32 %v245_v49  ;;  %v378_v49 = vld [vmem:[#allocation4 + $0x28] sm:$0xff] }
 0x544   :  { %v241_v46 = vpop.f32.mrf.mxu2 }
 0x545   :  { %v1132_v47 = vpop.eup %1131 }
 0x546   :  { %252 = vrot.lane.b32.xlu2 %v1132_v47, %s1396_s9  ;;  %v1526_v47 = vld [vmem:[#allocation10] sm:$0xff] }
 0x549   :  { %v1134_v50 = vpop.eup %1133 }
 0x54a   :  { %v247_v51 = vadd.f32 1.0, %v1134_v50 }
 0x54c   :  { %1135 = vrcp.f32 %v247_v51 }
 0x552   :  { %v1136_v52 = vpop.eup %1135 }
 0x553   :  { %v250_v55 = vmul.f32 %v1136_v52, %v208_v37 }
 0x5a0   :  { %v253_v53 = vpop.permute.xlu2 %252 }
 0x5a1   :  { %v255_v54 = vmul.f32 %v1136_v52, %v253_v53 }
 0x5a3   :  { %257 = vrot.lane.b32.xlu0 %v255_v54, %s1405_s2  ;;  %v1543_v54 = vld [vmem:[%s1666_s4] ss:$0 sm:$0xff] }
 0x615   :  { %v258_v56 = vpop.permute.xlu0 %257 }
 0x616   :  { %v260_v57 = vadd.f32 %v258_v56, %v250_v55 }
 0x618   :  { %1137 = vtanh.f32 %v260_v57 }
 0x61e   :  { %v1138_v58 = vpop.eup %1137 }
 0x61f   :  { %263 = vrot.lane.b32.xlu1 %v1138_v58, %s1396_s9 }
 0x691   :  { %v264_v59 = vpop.permute.xlu1 %263 }
 0x692   :  { %v1490_v60 = vmul.f32 %v1136_v52, %v264_v59 }
 0x694   :  { %v275_v61 = vpack.c.bf16 %v1490_v60, %v1490_v60 }
 0x696   :  { %277 = vrot.lane.b32.xlu2 %v275_v61, %s1405_s2 }
 0x6f0   :  { %v278_v62 = vpop.permute.xlu2 %277 }
 0x6f1   :  { %1062 = vmatmul.msk.bf16.vlgmr.msrb.gmra.mxu3 %vm123_vm0, %v278_v62 }
 0x774   :  { %v291_v0 = vpop.f32.mrf.mxu3 }
 0x775   :  { %v295_v1 = vadd.f32 %v291_v0, %v274_v63 }
 0x777   :  { %1139 = vtanh.f32 %v295_v1  ;;  %v296_v5 = vsub.f32 0.0, %v295_v1 }
 0x779   :  { %v297_v6 = vmul.f32 1.442695, %v296_v5 }
 0x77b   :  { %1141 = vpow2.f32 %v297_v6 }
 0x77c   :  { %v293_v3 = vpop.f32.mrf.mxu3 }
 0x77d   :  { %v1140_v4 = vpop.eup %1139 }
 0x77e   :  { %304 = vrot.lane.b32.xlu0 %v1140_v4, %s1396_s9 }
 0x781   :  { %v1142_v7 = vpop.eup %1141 }
 0x782   :  { %v299_v8 = vadd.f32 1.0, %v1142_v7 }
 0x784   :  { %1143 = vrcp.f32 %v299_v8 }
 0x78a   :  { %v1144_v9 = vpop.eup %1143 }
 0x78b   :  { %v302_v12 = vmul.f32 %v1144_v9, %v260_v57 }
 0x7f0   :  { %v305_v10 = vpop.permute.xlu0 %304 }
 0x7f1   :  { %v307_v11 = vmul.f32 %v1144_v9, %v305_v10 }
 0x7f3   :  { %309 = vrot.lane.b32.xlu1 %v307_v11, %s1405_s2 }
 0x865   :  { %v310_v13 = vpop.permute.xlu1 %309 }
 0x866   :  { %v312_v14 = vadd.f32 %v310_v13, %v302_v12 }
 0x868   :  { %1145 = vtanh.f32 %v312_v14 }
 0x86e   :  { %v1146_v15 = vpop.eup %1145 }
 0x86f   :  { %315 = vrot.lane.b32.xlu2 %v1146_v15, %s1396_s9 }
 0x8c9   :  { %v316_v16 = vpop.permute.xlu2 %315 }
 0x8ca   :  { %v1499_v17 = vmul.f32 %v1144_v9, %v316_v16 }
 0x8cc   :  { %v327_v18 = vpack.c.bf16 %v1499_v17, %v1499_v17 }
 0x8ce   :  { %329 = vrot.lane.b32.xlu0 %v327_v18, %s1405_s2 }
 0x940   :  { %v330_v19 = vpop.permute.xlu0 %329 }
 0x941   :  { %1063 = vmatmul.msk.bf16.vlgmr.msra.gmra.mxu0 %vm123_vm0, %v330_v19 }
 0x9be   :  { %v343_v22 = vpop.f32.mrf.mxu0 }
 0x9bf   :  { %v347_v23 = vadd.f32 %v343_v22, %v326_v21 }
 0x9c1   :  { %1147 = vtanh.f32 %v347_v23  ;;  %v348_v26 = vsub.f32 0.0, %v347_v23 }
 0x9c3   :  { %v349_v27 = vmul.f32 1.442695, %v348_v26 }
 0x9c5   :  { %1149 = vpow2.f32 %v349_v27 }
 0x9c6   :  { %v345_v24 = vpop.f32.mrf.mxu0 }
 0x9c7   :  { %v1148_v25 = vpop.eup %1147 }
 0x9c8   :  { %356 = vrot.lane.b32.xlu1 %v1148_v25, %s1396_s9 }
 0x9cb   :  { %v1150_v28 = vpop.eup %1149 }
 0x9cc   :  { %v351_v29 = vadd.f32 1.0, %v1150_v28 }
 0x9ce   :  { %1151 = vrcp.f32 %v351_v29 }
 0x9d4   :  { %v1152_v30 = vpop.eup %1151 }
 0x9d5   :  { %v354_v33 = vmul.f32 %v1152_v30, %v312_v14 }
 0xa3a   :  { %v357_v31 = vpop.permute.xlu1 %356 }
 0xa3b   :  { %v359_v32 = vmul.f32 %v1152_v30, %v357_v31 }
 0xa3d   :  { %361 = vrot.lane.b32.xlu2 %v359_v32, %s1405_s2 }
 0xa45   :  { %165 = vrot.lane.b32.xlu2 %v1472_v20, %s1405_s2 }
 0xa97   :  { %v362_v34 = vpop.permute.xlu2 %361 }
 0xa98   :  { %v1509_v35 = vadd.f32 %v362_v34, %v354_v33 }
 0xa9a   :  { %1153 = vtanh.f32 %v1509_v35 }
 0xa9f   :  { %v166_v36 = vpop.permute.xlu2 %165 }
 0xaa0   :  { %v1154_v37 = vpop.eup %1153  ;;  %168 = vst.msk [vmem:[#allocation3] sm:$0xff] %vm123_vm0, %v166_v36 }
 0xaa1   :  { %367 = vrot.lane.b32.xlu0 %v1154_v37, %s1396_s9 }
 0xaa7   :  { %v537_v44 = vld [vmem:[#allocation3] sm:$0xff] }
 0xaa9   :  { %216 = vrot.lane.b32.xlu0 %v1481_v40, %s1405_s2  ;;  %v1523_v40 = vld [vmem:[#allocation10 + $0x8] sm:$0xff] }
 0xaaa   :  { %637 = vmatpush.bf16.msra.mxu1 %v1523_v40  ;;  %684 = vmatpush.bf16.msra.mxu2 %v1523_v40 }
 0xaab   :  { %731 = vmatpush.bf16.msrb.mxu3 %v1523_v40 }
 0xaae   :  { %638 = vmatpush.bf16.msra.mxu1 %v1526_v47  ;;  %685 = vmatpush.bf16.msra.mxu2 %v1526_v47 }
 0xaaf   :  { %732 = vmatpush.bf16.msrb.mxu3 %v1526_v47 }
 0xb13   :  { %v368_v20 = vpop.permute.xlu0 %367 }
 0xb14   :  { %v1516_v41 = vmul.f32 %v1152_v30, %v368_v20  ;;  %v430_v30 = vld [vmem:[#allocation4 + $0x30] sm:$0xff] }
 0xb16   :  { %v379_v42 = vpack.c.bf16 %v1516_v41, %v1516_v41 }
 0xb18   :  { %381 = vrot.lane.b32.xlu1 %v379_v42, %s1405_s2 }
 0xb1b   :  { %v217_v43 = vpop.permute.xlu0 %216 }
 0xb1c   :  { %220 = vst.msk [vmem:[#allocation3 + $0x8] sm:$0xff] %vm123_vm0, %v217_v43 }
 0xb23   :  { %v538_v45 = vld [vmem:[#allocation3 + $0x8] sm:$0xff] }
 0xb24   :  { %v545_v46 = vpack.c.bf16 %v538_v45, %v537_v44 }
 0xb26   :  { %1075 = vmatmul.msk.bf16.vlgmr.msrb.gmra.mxu0 %vm123_vm0, %v545_v46 }
 0xb8a   :  { %v382_v48 = vpop.permute.xlu1 %381 }
 0xb8b   :  { %1064 = vmatmul.msk.bf16.vlgmr.msrb.gmra.mxu1 %vm123_vm0, %v382_v48 }
 0xb8c   :  { %778 = vmatpush.bf16.msrb.mxu1 %v1523_v40 }
 0xb90   :  { %779 = vmatpush.bf16.msrb.mxu1 %v1526_v47 }
 0xb9b   :  { %639 = vmatmul.bf16.vlgmr.msra.gmra.mxu1 %v1404_v2 }
 0xb9c   :  { %919 = vmatpush.bf16.msra.mxu1 %v1523_v40 }
 0xba0   :  { %920 = vmatpush.bf16.msra.mxu1 %v1526_v47 }
 0xba3   :  { %v590_v55 = vpop.f32.mrf.mxu0 }
 0xba4   :  { %v591_v2 = vadd.f32 %v1543_v54, %v590_v55 }
 0xc08   :  { %v395_v50 = vpop.f32.mrf.mxu1 }
 0xc09   :  { %v399_v51 = vadd.f32 %v395_v50, %v378_v49 }
 0xc0b   :  { %1155 = vtanh.f32 %v399_v51  ;;  %v400_v63 = vsub.f32 0.0, %v399_v51 }
 0xc0d   :  { %v401_v0 = vmul.f32 1.442695, %v400_v63 }
 0xc10   :  { %v397_v52 = vpop.f32.mrf.mxu1 }
 0xc11   :  { %v1156_v53 = vpop.eup %1155 }
 0xc12   :  { %408 = vrot.lane.b32.xlu1 %v1156_v53, %s1396_s9 }
 0xc18   :  { %v640_v56 = vpop.f32.mrf.mxu1 }
 0xc19   :  { %v644_v57 = vadd.f32 %v640_v56, %v591_v2 }
 0xc1b   :  { %1157 = vtanh.f32 %v644_v57  ;;  %v645_v61 = vsub.f32 0.0, %v644_v57 }
 0xc1d   :  { %v646_v62 = vmul.f32 1.442695, %v645_v61 }
 0xc1f   :  { %1159 = vpow2.f32 %v646_v62 }
 0xc20   :  { %v642_v58 = vpop.f32.mrf.mxu1  ;;  %1161 = vpow2.f32 %v401_v0 }
 0xc21   :  { %v1158_v59 = vpop.eup %1157 }
 0xc22   :  { %653 = vrot.lane.b32.xlu2 %v1158_v59, %s1396_s9 }
 0xc25   :  { %v1160_v1 = vpop.eup %1159 }
 0xc26   :  { %v648_v3 = vadd.f32 1.0, %v1160_v1  ;;  %v1162_v4 = vpop.eup %1161 }
 0xc27   :  { %v403_v5 = vadd.f32 1.0, %v1162_v4 }
 0xc28   :  { %1163 = vrcp.f32 %v648_v3 }
 0xc29   :  { %1165 = vrcp.f32 %v403_v5 }
 0xc2e   :  { %v1164_v6 = vpop.eup %1163 }
 0xc2f   :  { %v1166_v9 = vpop.eup %1165  ;;  %v651_v12 = vmul.f32 0.0, %v1164_v6 }
 0xc30   :  { %v406_v15 = vmul.f32 %v1166_v9, %v1509_v35  ;;  %v592_v35 = vpop.f32.mrf.mxu0 }
 0xc31   :  { %v593_v36 = vadd.f32 %v1543_v54, %v592_v35 }
 0xc7c   :  { %v654_v7 = vpop.permute.xlu2 %653 }
 0xc7d   :  { %v656_v8 = vmul.f32 %v1164_v6, %v654_v7 }
 0xc7f   :  { %658 = vrot.lane.b32.xlu1 %v656_v8, %s1405_s2 }
 0xc84   :  { %v409_v10 = vpop.permute.xlu1 %408 }
 0xc85   :  { %v411_v11 = vmul.f32 %v1166_v9, %v409_v10 }
 0xc87   :  { %413 = vrot.lane.b32.xlu0 %v411_v11, %s1405_s2 }
 0xcf1   :  { %v659_v13 = vpop.permute.xlu1 %658 }
 0xcf2   :  { %v1549_v14 = vadd.f32 %v659_v13, %v651_v12 }
 0xcf4   :  { %1167 = vtanh.f32 %v1549_v14 }
 0xcf9   :  { %v414_v16 = vpop.permute.xlu0 %413 }
 0xcfa   :  { %v1168_v18 = vpop.eup %1167  ;;  %v416_v19 = vadd.f32 %v414_v16, %v406_v15 }
 0xcfb   :  { %664 = vrot.lane.b32.xlu0 %v1168_v18, %s1396_s9 }
 0xcfc   :  { %1169 = vtanh.f32 %v416_v19 }
 0xd02   :  { %v1170_v21 = vpop.eup %1169 }
 0xd03   :  { %419 = vrot.lane.b32.xlu2 %v1170_v21, %s1396_s9 }
 0xd5d   :  { %v420_v22 = vpop.permute.xlu2 %419 }
 0xd5e   :  { %v1555_v23 = vmul.f32 %v1166_v9, %v420_v22 }
 0xd60   :  { %v431_v24 = vpack.c.bf16 %v1555_v23, %v1555_v23 }
 0xd62   :  { %433 = vrot.lane.b32.xlu1 %v431_v24, %s1405_s2 }
 0xd6d   :  { %v665_v25 = vpop.permute.xlu0 %664 }
 0xd6e   :  { %v1560_v26 = vmul.f32 %v1164_v6, %v665_v25 }
 0xd70   :  { %v671_v27 = vpack.c.bf16 %v1560_v26, %v1560_v26 }
 0xd72   :  { %673 = vrot.lane.b32.xlu2 %v671_v27, %s1405_s2 }
 0xdcc   :  { %v674_v29 = vpop.permute.xlu2 %673 }
 0xdd4   :  { %v434_v28 = vpop.permute.xlu1 %433 }
 0xdd5   :  { %1065 = vmatmul.msk.bf16.vlgmr.msrb.gmra.mxu2 %vm123_vm0, %v434_v28 }
 0xdd6   :  { %825 = vmatpush.bf16.msrb.mxu2 %v1523_v40 }
 0xdda   :  { %826 = vmatpush.bf16.msrb.mxu2 %v1526_v47 }
 0xde5   :  { %1087 = vmatmul.msk.bf16.vlgmr.msra.gmra.mxu2 %vm123_vm0, %v674_v29 }
 0xde6   :  { %966 = vmatpush.bf16.msra.mxu2 %v1523_v40 }
 0xdea   :  { %967 = vmatpush.bf16.msra.mxu2 %v1526_v47 }
 0xe58   :  { %v447_v31 = vpop.f32.mrf.mxu2 }
 0xe59   :  { %v451_v32 = vadd.f32 %v447_v31, %v430_v30 }
 0xe5b   :  { %1171 = vtanh.f32 %v451_v32  ;;  %v452_v42 = vsub.f32 0.0, %v451_v32 }
 0xe5d   :  { %v453_v43 = vmul.f32 1.442695, %v452_v42 }
 0xe60   :  { %v449_v33 = vpop.f32.mrf.mxu2 }
 0xe61   :  { %v1172_v34 = vpop.eup %1171 }
 0xe62   :  { %460 = vrot.lane.b32.xlu0 %v1172_v34, %s1396_s9 }
 0xe68   :  { %v687_v37 = vpop.f32.mrf.mxu2 }
 0xe69   :  { %v691_v38 = vadd.f32 %v687_v37, %v593_v36 }
 0xe6b   :  { %1173 = vtanh.f32 %v691_v38  ;;  %v692_v45 = vsub.f32 0.0, %v691_v38 }
 0xe6c   :  { %1175 = vpow2.f32 %v453_v43 }
 0xe6d   :  { %v693_v48 = vmul.f32 1.442695, %v692_v45 }
 0xe70   :  { %v689_v39 = vpop.f32.mrf.mxu2 }
 0xe71   :  { %v1174_v20 = vpop.eup %1173 }
 0xe72   :  { %700 = vrot.lane.b32.xlu1 %v1174_v20, %s1396_s9  ;;  %v1176_v44 = vpop.eup %1175 }
 0xe73   :  { %v455_v46 = vadd.f32 1.0, %v1176_v44 }
 0xe75   :  { %1177 = vrcp.f32 %v455_v46 }
 0xe76   :  { %1179 = vpow2.f32 %v693_v48 }
 0xe7b   :  { %v1178_v49 = vpop.eup %1177 }
 0xe7c   :  { %v1180_v52 = vpop.eup %1179  ;;  %v458_v57 = vmul.f32 %v1178_v49, %v416_v19 }
 0xe7d   :  { %v695_v53 = vadd.f32 1.0, %v1180_v52 }
 0xe7f   :  { %1181 = vrcp.f32 %v695_v53 }
 0xe85   :  { %v1182_v55 = vpop.eup %1181 }
 0xe86   :  { %v698_v62 = vmul.f32 %v1182_v55, %v1549_v14 }
 0xed4   :  { %v461_v50 = vpop.permute.xlu0 %460 }
 0xed5   :  { %v463_v51 = vmul.f32 %v1178_v49, %v461_v50 }
 0xed7   :  { %465 = vrot.lane.b32.xlu2 %v463_v51, %s1405_s2 }
 0xee4   :  { %v701_v2 = vpop.permute.xlu1 %700 }
 0xee5   :  { %v703_v56 = vmul.f32 %v1182_v55, %v701_v2 }
 0xee7   :  { %705 = vrot.lane.b32.xlu0 %v703_v56, %s1405_s2 }
 0xf31   :  { %v466_v58 = vpop.permute.xlu2 %465 }
 0xf32   :  { %v1576_v59 = vadd.f32 %v466_v58, %v458_v57 }
 0xf34   :  { %1183 = vtanh.f32 %v1576_v59 }
 0xf3a   :  { %v1184_v61 = vpop.eup %1183 }
 0xf3b   :  { %471 = vrot.lane.b32.xlu1 %v1184_v61, %s1396_s9 }
 0xf43   :  { %268 = vrot.lane.b32.xlu1 %v1490_v60, %s1405_s2 }
 0xf59   :  { %v706_v63 = vpop.permute.xlu0 %705 }
 0xf5a   :  { %v708_v0 = vadd.f32 %v706_v63, %v698_v62 }
 0xf5c   :  { %1185 = vtanh.f32 %v708_v0 }
 0xf62   :  { %v1186_v1 = vpop.eup %1185 }
 0xf63   :  { %711 = vrot.lane.b32.xlu2 %v1186_v1, %s1396_s9 }
 0xf6b   :  { %320 = vrot.lane.b32.xlu2 %v1499_v17, %s1405_s2 }
 0xfad   :  { %v472_v3 = vpop.permute.xlu1 %471 }
 0xfae   :  { %v1586_v4 = vmul.f32 %v1178_v49, %v472_v3 }
 0xfb0   :  { %v483_v5 = vpack.c.bf16 %v1586_v4, %v1586_v4 }
 0xfb2   :  { %485 = vrot.lane.b32.xlu0 %v483_v5, %s1405_s2 }
 0xfb5   :  { %v269_v60 = vpop.permute.xlu1 %268 }
 0xfb6   :  { %272 = vst.msk [vmem:[#allocation3 + $0x10] sm:$0xff] %vm123_vm0, %v269_v60 }
 0xfbd   :  { %v712_v6 = vpop.permute.xlu2 %711  ;;  %v539_v17 = vld [vmem:[#allocation3 + $0x10] sm:$0xff] }
 0xfbe   :  { %v714_v7 = vmul.f32 %v1182_v55, %v712_v6 }
 0xfc0   :  { %v718_v8 = vpack.c.bf16 %v714_v7, %v714_v7  ;;  %v715_v36 = vadd.f32 %v714_v7, %v1560_v26 }
 0xfc2   :  { %720 = vrot.lane.b32.xlu0 %v718_v8, %s1405_s2 }
 0xfc5   :  { %v321_v9 = vpop.permute.xlu2 %320 }
 0xfc6   :  { %324 = vst.msk [vmem:[#allocation3 + $0x18] sm:$0xff] %vm123_vm0, %v321_v9 }
 0xfcd   :  { %v540_v10 = vld [vmem:[#allocation3 + $0x18] sm:$0xff] }
 0xfce   :  { %v546_v11 = vpack.c.bf16 %v540_v10, %v539_v17 }
 0xfd0   :  { %1076 = vmatmul.msk.bf16.gmra.mxu0 %vm123_vm0, %v546_v11 }
0x1024   :  { %v486_v12 = vpop.permute.xlu0 %485 }
0x1025   :  { %1066 = vmatmul.msk.bf16.vlgmr.msra.gmra.mxu3 %vm123_vm0, %v486_v12 }
0x1026   :  { %872 = vmatpush.bf16.msra.mxu3 %v1523_v40 }
0x102a   :  { %873 = vmatpush.bf16.msra.mxu3 %v1526_v47 }
0x1034   :  { %v721_v13 = vpop.permute.xlu0 %720 }
0x1035   :  { %1088 = vmatmul.msk.bf16.vlgmr.msrb.gmra.mxu3 %vm123_vm0, %v721_v13 }
0x104d   :  { %v595_v16 = vpop.f32.mrf.mxu0 }
0x104e   :  { %v596_v18 = vadd.f32 %v1543_v54, %v595_v16  ;;  %v482_v16 = vld [vmem:[#allocation4 + $0x38] sm:$0xff] }
0x1055   :  { %v597_v42 = vpop.f32.mrf.mxu0 }
0x1056   :  { %v598_v43 = vadd.f32 %v1543_v54, %v597_v42 }
0x10a8   :  { %v1599_v14 = vpop.f32.mrf.mxu3 }
0x10b0   :  { %v501_v15 = vpop.f32.mrf.mxu3 }
0x10b8   :  { %v734_v19 = vpop.f32.mrf.mxu3 }
0x10b9   :  { %v738_v21 = vadd.f32 %v734_v19, %v596_v18  ;;  %v503_v19 = vadd.f32 %v1599_v14, %v482_v16 }
0x10bb   :  { %1187 = vtanh.f32 %v738_v21  ;;  %v739_v25 = vsub.f32 0.0, %v738_v21 }
0x10bd   :  { %v740_v40 = vmul.f32 1.442695, %v739_v25 }
0x10bf   :  { %1189 = vpow2.f32 %v740_v40 }
0x10c0   :  { %v736_v22 = vpop.f32.mrf.mxu3 }
0x10c1   :  { %v1188_v24 = vpop.eup %1187 }
0x10c2   :  { %747 = vrot.lane.b32.xlu1 %v1188_v24, %s1396_s9 }
0x10c5   :  { %v1190_v47 = vpop.eup %1189 }
0x10c6   :  { %v742_v27 = vadd.f32 1.0, %v1190_v47 }
0x10c8   :  { %1191 = vrcp.f32 %v742_v27 }
0x10ce   :  { %v1192_v28 = vpop.eup %1191 }
0x10cf   :  { %v745_v31 = vmul.f32 %v1192_v28, %v708_v0 }
0x1134   :  { %v748_v29 = vpop.permute.xlu1 %747 }
0x1135   :  { %v750_v30 = vmul.f32 %v1192_v28, %v748_v29 }
0x1137   :  { %752 = vrot.lane.b32.xlu2 %v750_v30, %s1405_s2 }
0x1191   :  { %v753_v32 = vpop.permute.xlu2 %752 }
0x1192   :  { %v755_v33 = vadd.f32 %v753_v32, %v745_v31 }
0x1194   :  { %1193 = vtanh.f32 %v755_v33 }
0x119a   :  { %v1194_v34 = vpop.eup %1193 }
0x119b   :  { %758 = vrot.lane.b32.xlu0 %v1194_v34, %s1396_s9 }
0x120d   :  { %v759_v35 = vpop.permute.xlu0 %758 }
0x120e   :  { %v761_v37 = vmul.f32 %v1192_v28, %v759_v35  ;;  %v504_v28 = vsub.f32 0.0, %v503_v19 }
0x1210   :  { %v762_v38 = vadd.f32 %v761_v37, %v715_v36  ;;  %v765_v39 = vpack.c.bf16 %v761_v37, %v761_v37  ;;  %v505_v29 = vmul.f32 1.442695, %v504_v28 }
0x1212   :  { %767 = vrot.lane.b32.xlu1 %v765_v39, %s1405_s2 }
0x1284   :  { %v768_v20 = vpop.permute.xlu1 %767 }
0x1285   :  { %1089 = vmatmul.msk.bf16.vlgmr.msrb.gmra.mxu1 %vm123_vm0, %v768_v20 }
0x1302   :  { %v781_v44 = vpop.f32.mrf.mxu1 }
0x1303   :  { %v785_v45 = vadd.f32 %v781_v44, %v598_v43 }
0x1305   :  { %1195 = vtanh.f32 %v785_v45  ;;  %v786_v26 = vsub.f32 0.0, %v785_v45 }
0x1307   :  { %v787_v49 = vmul.f32 1.442695, %v786_v26 }
0x1309   :  { %1197 = vpow2.f32 %v787_v49 }
0x130a   :  { %v783_v46 = vpop.f32.mrf.mxu1 }
0x130b   :  { %v1196_v48 = vpop.eup %1195 }
0x130c   :  { %794 = vrot.lane.b32.xlu2 %v1196_v48, %s1396_s9 }
0x130f   :  { %v1198_v50 = vpop.eup %1197 }
0x1310   :  { %v789_v51 = vadd.f32 1.0, %v1198_v50 }
0x1312   :  { %1199 = vrcp.f32 %v789_v51 }
0x1314   :  { %372 = vrot.lane.b32.xlu2 %v1516_v41, %s1405_s2 }
0x1318   :  { %v1200_v52 = vpop.eup %1199 }
0x1319   :  { %v792_v56 = vmul.f32 %v1200_v52, %v755_v33 }
0x1366   :  { %v795_v53 = vpop.permute.xlu2 %794 }
0x1367   :  { %v797_v55 = vmul.f32 %v1200_v52, %v795_v53 }
0x1369   :  { %799 = vrot.lane.b32.xlu0 %v797_v55, %s1405_s2 }
0x136e   :  { %v373_v2 = vpop.permute.xlu2 %372 }
0x136f   :  { %376 = vst.msk [vmem:[#allocation3 + $0x20] sm:$0xff] %vm123_vm0, %v373_v2 }
0x1371   :  { %424 = vrot.lane.b32.xlu0 %v1555_v23, %s1405_s2 }
0x1376   :  { %v541_v62 = vld [vmem:[#allocation3 + $0x20] sm:$0xff] }
0x13db   :  { %v800_v57 = vpop.permute.xlu0 %799 }
0x13dc   :  { %v802_v41 = vadd.f32 %v800_v57, %v792_v56 }
0x13de   :  { %1201 = vtanh.f32 %v802_v41 }
0x13e3   :  { %v425_v58 = vpop.permute.xlu0 %424 }
0x13e4   :  { %v1202_v61 = vpop.eup %1201  ;;  %428 = vst.msk [vmem:[#allocation3 + $0x28] sm:$0xff] %vm123_vm0, %v425_v58 }
0x13e5   :  { %805 = vrot.lane.b32.xlu1 %v1202_v61, %s1396_s9 }
0x13eb   :  { %v542_v63 = vld [vmem:[#allocation3 + $0x28] sm:$0xff] }
0x13ec   :  { %v547_v0 = vpack.c.bf16 %v542_v63, %v541_v62 }
0x13ee   :  { %1077 = vmatmul.msk.bf16.gmra.mxu0 %vm123_vm0, %v547_v0 }
0x1457   :  { %v806_v1 = vpop.permute.xlu1 %805 }
0x1458   :  { %v808_v3 = vmul.f32 %v1200_v52, %v806_v1 }
0x145a   :  { %v809_v5 = vadd.f32 %v808_v3, %v762_v38  ;;  %v812_v60 = vpack.c.bf16 %v808_v3, %v808_v3 }
0x145c   :  { %814 = vrot.lane.b32.xlu1 %v812_v60, %s1405_s2 }
0x146b   :  { %v600_v6 = vpop.f32.mrf.mxu0 }
0x146c   :  { %v601_v7 = vadd.f32 %v1543_v54, %v600_v6 }
0x1473   :  { %v602_v39 = vpop.f32.mrf.mxu0 }
0x1474   :  { %v603_v20 = vadd.f32 %v1543_v54, %v602_v39 }
0x14ce   :  { %v815_v23 = vpop.permute.xlu1 %814 }
0x14cf   :  { %1090 = vmatmul.msk.bf16.vlgmr.msrb.gmra.mxu2 %vm123_vm0, %v815_v23 }
0x1552   :  { %v828_v8 = vpop.f32.mrf.mxu2 }
0x1553   :  { %v832_v9 = vadd.f32 %v828_v8, %v601_v7 }
0x1555   :  { %1203 = vtanh.f32 %v832_v9  ;;  %v833_v11 = vsub.f32 0.0, %v832_v9 }
0x1557   :  { %v834_v12 = vmul.f32 1.442695, %v833_v11 }
0x1559   :  { %1205 = vpow2.f32 %v834_v12 }
0x155a   :  { %v830_v17 = vpop.f32.mrf.mxu2 }
0x155b   :  { %v1204_v10 = vpop.eup %1203 }
0x155c   :  { %841 = vrot.lane.b32.xlu2 %v1204_v10, %s1396_s9 }
0x155f   :  { %v1206_v13 = vpop.eup %1205 }
0x1560   :  { %v836_v15 = vadd.f32 1.0, %v1206_v13 }
0x1562   :  { %1207 = vrcp.f32 %v836_v15 }
0x1563   :  { %1209 = vtanh.f32 %v503_v19 }
0x1568   :  { %v1208_v18 = vpop.eup %1207 }
0x1569   :  { %v1210_v24 = vpop.eup %1209  ;;  %v839_v25 = vmul.f32 %v1208_v18, %v802_v41 }
0x15b6   :  { %v842_v21 = vpop.permute.xlu2 %841 }
0x15b7   :  { %v844_v22 = vmul.f32 %v1208_v18, %v842_v21 }
0x15b9   :  { %846 = vrot.lane.b32.xlu0 %v844_v22, %s1405_s2 }
0x15c1   :  { %512 = vrot.lane.b32.xlu0 %v1210_v24, %s1396_s9 }
0x162b   :  { %v847_v40 = vpop.permute.xlu0 %846 }
0x162c   :  { %v849_v47 = vadd.f32 %v847_v40, %v839_v25 }
0x162e   :  { %1211 = vtanh.f32 %v849_v47 }
0x162f   :  { %1213 = vpow2.f32 %v505_v29 }
0x1633   :  { %v513_v35 = vpop.permute.xlu0 %512 }
0x1634   :  { %v1212_v27 = vpop.eup %1211 }
0x1635   :  { %852 = vrot.lane.b32.xlu1 %v1212_v27, %s1396_s9  ;;  %v1214_v30 = vpop.eup %1213 }
0x1636   :  { %v507_v14 = vadd.f32 1.0, %v1214_v30 }
0x1638   :  { %1215 = vrcp.f32 %v507_v14 }
0x163e   :  { %v1216_v36 = vpop.eup %1215 }
0x163f   :  { %v515_v37 = vmul.f32 %v1216_v36, %v513_v35  ;;  %v510_v45 = vmul.f32 %v1216_v36, %v1576_v59 }
0x16a7   :  { %v853_v31 = vpop.permute.xlu1 %852 }
0x16a8   :  { %v855_v32 = vmul.f32 %v1208_v18, %v853_v31 }
0x16aa   :  { %v856_v33 = vadd.f32 %v855_v32, %v809_v5  ;;  %v859_v34 = vpack.c.bf16 %v855_v32, %v855_v32 }
0x16ac   :  { %861 = vrot.lane.b32.xlu2 %v859_v34, %s1405_s2 }
0x16b4   :  { %517 = vrot.lane.b32.xlu2 %v515_v37, %s1405_s2 }
0x1706   :  { %v862_v38 = vpop.permute.xlu2 %861 }
0x1707   :  { %1091 = vmatmul.msk.bf16.vlgmr.msra.gmra.mxu3 %vm123_vm0, %v862_v38 }
0x170e   :  { %v518_v44 = vpop.permute.xlu2 %517 }
0x170f   :  { %v520_v46 = vadd.f32 %v518_v44, %v510_v45 }
0x178a   :  { %v875_v42 = vpop.f32.mrf.mxu3 }
0x178b   :  { %v879_v43 = vadd.f32 %v875_v42, %v603_v20 }
0x178d   :  { %1217 = vtanh.f32 %v879_v43  ;;  %v880_v50 = vsub.f32 0.0, %v879_v43 }
0x178e   :  { %1219 = vtanh.f32 %v520_v46 }
0x178f   :  { %v881_v51 = vmul.f32 1.442695, %v880_v50  ;;  %v1000_v50 = vld [vmem:[#allocation12 + $0x8] sm:$0xff] }
0x1791   :  { %1221 = vpow2.f32 %v881_v51  ;;  %v999_v51 = vld [vmem:[#allocation12] sm:$0xff] }
0x1792   :  { %v877_v48 = vpop.f32.mrf.mxu3 }
0x1793   :  { %v1218_v26 = vpop.eup %1217 }
0x1794   :  { %888 = vrot.lane.b32.xlu1 %v1218_v26, %s1396_s9  ;;  %v1220_v49 = vpop.eup %1219  ;;  %v1002_v26 = vld [vmem:[#allocation12 + $0x18] sm:$0xff] }
0x1795   :  { %1024 = vmatpush.msrb.mxu3 %v1002_v26 }
0x1797   :  { %v1222_v52 = vpop.eup %1221 }
0x1798   :  { %v883_v53 = vadd.f32 1.0, %v1222_v52 }
0x179a   :  { %1223 = vrcp.f32 %v883_v53 }
0x179c   :  { %523 = vrot.lane.b32.xlu1 %v1220_v49, %s1396_s9  ;;  %v1001_v49 = vld [vmem:[#allocation12 + $0x10] sm:$0xff] }
0x179d   :  { %1025 = vmatpush.msrb.mxu3 %v1001_v49 }
0x179f   :  { %1026 = vmatpush.msrb.mxu3 %v1000_v50 }
0x17a0   :  { %v1224_v55 = vpop.eup %1223 }
0x17a1   :  { %v886_v41 = vmul.f32 %v1224_v55, %v849_v47  ;;  %1027 = vmatpush.msrb.mxu3 %v999_v51 }
0x1806   :  { %v889_v2 = vpop.permute.xlu1 %888 }
0x1807   :  { %v891_v56 = vmul.f32 %v1224_v55, %v889_v2 }
0x1809   :  { %893 = vrot.lane.b32.xlu0 %v891_v56, %s1405_s2 }
0x180e   :  { %v524_v59 = vpop.permute.xlu1 %523 }
0x180f   :  { %v526_v57 = vmul.f32 %v1216_v36, %v524_v59  ;;  %v1114_v59 = vld [vmem:[%s1668_s6] ss:$0 sm:$0xff] }
0x1811   :  { %528 = vrot.lane.b32.xlu1 %v526_v57, %s1405_s2  ;;  %476 = vrot.lane.b32.xlu0 %v1586_v4, %s1405_s2 }
0x187b   :  { %v894_v58 = vpop.permute.xlu0 %893 }
0x187c   :  { %v896_v61 = vadd.f32 %v894_v58, %v886_v41 }
0x187e   :  { %1225 = vtanh.f32 %v896_v61 }
0x1883   :  { %v529_v62 = vpop.permute.xlu1 %528  ;;  %v477_v63 = vpop.permute.xlu0 %476 }
0x1884   :  { %v1226_v0 = vpop.eup %1225  ;;  %532 = vst.msk [vmem:[#allocation3 + $0x38] sm:$0xff] %vm123_vm0, %v529_v62 }
0x1885   :  { %480 = vst.msk [vmem:[#allocation3 + $0x30] sm:$0xff] %vm123_vm0, %v477_v63  ;;  %899 = vrot.lane.b32.xlu2 %v1226_v0, %s1396_s9 }
0x188b   :  { %v544_v1 = vld [vmem:[#allocation3 + $0x38] sm:$0xff] }
0x188c   :  { %v543_v3 = vld [vmem:[#allocation3 + $0x30] sm:$0xff] }
0x188d   :  { %v548_v5 = vpack.c.bf16 %v544_v1, %v543_v3 }
0x188f   :  { %1078 = vmatmul.msk.bf16.gmra.mxu0 %vm123_vm0, %v548_v5 }
0x18df   :  { %v900_v60 = vpop.permute.xlu2 %899 }
0x18e0   :  { %v902_v4 = vmul.f32 %v1224_v55, %v900_v60 }
0x18e2   :  { %v903_v23 = vadd.f32 %v902_v4, %v856_v33  ;;  %v906_v6 = vpack.c.bf16 %v902_v4, %v902_v4 }
0x18e4   :  { %908 = vrot.lane.b32.xlu2 %v906_v6, %s1405_s2 }
0x190c   :  { %v605_v8 = vpop.f32.mrf.mxu0 }
0x190d   :  { %v606_v9 = vadd.f32 %v1543_v54, %v605_v8 }
0x1914   :  { %v607_v31 = vpop.f32.mrf.mxu0 }
0x1915   :  { %v608_v32 = vadd.f32 %v1543_v54, %v607_v31 }
0x193e   :  { %v909_v7 = vpop.permute.xlu2 %908 }
0x193f   :  { %1092 = vmatmul.msk.bf16.vlgmr.msra.gmra.mxu1 %vm123_vm0, %v909_v7 }
0x19bc   :  { %v922_v17 = vpop.f32.mrf.mxu1 }
0x19bd   :  { %v926_v10 = vadd.f32 %v922_v17, %v606_v9 }
0x19bf   :  { %1227 = vtanh.f32 %v926_v10  ;;  %v927_v13 = vsub.f32 0.0, %v926_v10 }
0x19c1   :  { %v928_v15 = vmul.f32 1.442695, %v927_v13 }
0x19c3   :  { %1229 = vpow2.f32 %v928_v15 }
0x19c4   :  { %v924_v11 = vpop.f32.mrf.mxu1 }
0x19c5   :  { %v1228_v12 = vpop.eup %1227 }
0x19c6   :  { %935 = vrot.lane.b32.xlu0 %v1228_v12, %s1396_s9 }
0x19c9   :  { %v1230_v16 = vpop.eup %1229 }
0x19ca   :  { %v930_v18 = vadd.f32 1.0, %v1230_v16 }
0x19cc   :  { %1231 = vrcp.f32 %v930_v18 }
0x19d2   :  { %v1232_v19 = vpop.eup %1231 }
0x19d3   :  { %v933_v24 = vmul.f32 %v1232_v19, %v896_v61 }
0x1a38   :  { %v936_v21 = vpop.permute.xlu0 %935 }
0x1a39   :  { %v938_v22 = vmul.f32 %v1232_v19, %v936_v21 }
0x1a3b   :  { %940 = vrot.lane.b32.xlu1 %v938_v22, %s1405_s2 }
0x1aad   :  { %v941_v25 = vpop.permute.xlu1 %940 }
0x1aae   :  { %v943_v40 = vadd.f32 %v941_v25, %v933_v24 }
0x1ab0   :  { %1233 = vtanh.f32 %v943_v40 }
0x1ab6   :  { %v1234_v47 = vpop.eup %1233 }
0x1ab7   :  { %946 = vrot.lane.b32.xlu2 %v1234_v47, %s1396_s9 }
0x1b11   :  { %v947_v27 = vpop.permute.xlu2 %946 }
0x1b12   :  { %v949_v28 = vmul.f32 %v1232_v19, %v947_v27 }
0x1b14   :  { %v950_v29 = vadd.f32 %v949_v28, %v903_v23  ;;  %v953_v30 = vpack.c.bf16 %v949_v28, %v949_v28 }
0x1b16   :  { %955 = vrot.lane.b32.xlu0 %v953_v30, %s1405_s2 }
0x1b88   :  { %v956_v14 = vpop.permute.xlu0 %955 }
0x1b89   :  { %1093 = vmatmul.msk.bf16.vlgmr.msra.gmra.mxu2 %vm123_vm0, %v956_v14 }
0x1c0c   :  { %v969_v33 = vpop.f32.mrf.mxu2 }
0x1c0d   :  { %v973_v34 = vadd.f32 %v969_v33, %v608_v32 }
0x1c0f   :  { %1235 = vtanh.f32 %v973_v34  ;;  %v974_v37 = vsub.f32 0.0, %v973_v34 }
0x1c11   :  { %v975_v38 = vmul.f32 1.442695, %v974_v37 }
0x1c13   :  { %1237 = vpow2.f32 %v975_v38 }
0x1c14   :  { %v971_v35 = vpop.f32.mrf.mxu2 }
0x1c15   :  { %v1236_v36 = vpop.eup %1235 }
0x1c16   :  { %982 = vrot.lane.b32.xlu1 %v1236_v36, %s1396_s9 }
0x1c19   :  { %v1238_v39 = vpop.eup %1237 }
0x1c1a   :  { %v977_v20 = vadd.f32 1.0, %v1238_v39 }
0x1c1c   :  { %1239 = vrcp.f32 %v977_v20 }
0x1c22   :  { %v1240_v42 = vpop.eup %1239 }
0x1c23   :  { %v980_v45 = vmul.f32 %v1240_v42, %v943_v40 }
0x1c88   :  { %v983_v43 = vpop.permute.xlu1 %982 }
0x1c89   :  { %v985_v44 = vmul.f32 %v1240_v42, %v983_v43 }
0x1c8b   :  { %987 = vrot.lane.b32.xlu2 %v985_v44, %s1405_s2 }
0x1ce5   :  { %v988_v54 = vpop.permute.xlu2 %987 }
0x1ce6   :  { %v990_v46 = vadd.f32 %v988_v54, %v980_v45 }
0x1ce8   :  { %1241 = vtanh.f32 %v990_v46 }
0x1cee   :  { %v1242_v48 = vpop.eup %1241 }
0x1cef   :  { %993 = vrot.lane.b32.xlu0 %v1242_v48, %s1396_s9 }
0x1d61   :  { %v994_v52 = vpop.permute.xlu0 %993 }
0x1d62   :  { %v996_v53 = vmul.f32 %v1240_v42, %v994_v52 }
0x1d64   :  { %v997_v55 = vadd.f32 %v996_v53, %v950_v29 }
0x1d66   :  { %v998_v2 = vmul.f32 0.125, %v997_v55 }
0x1d68   :  { %1008 = vrot.lane.b32.xlu1 %v998_v2, %s1405_s2 }
0x1dda   :  { %v1009_v56 = vpop.permute.xlu1 %1008 }
0x1ddb   :  { %1094 = vmatmul.msk.f32.vlgmr.msrb.gmra.mxu3 %vm123_vm0, %v1009_v56 }
0x1e5e   :  { %v1029_v57 = vpop.f32.mrf.mxu3 }
0x1e5f   :  { %v1030_v41 = vadd.f32 %v1114_v59, %v1029_v57 }
0x1e61   :  { %1032 = vst [vmem:[#allocation13] sm:$0xff] %v1030_v41 }
0x1e62   :  { %1043 = dma.vmem_to_hbm [thread:$0]  %s1039_s30, 128, %s1041_s10, [#allocation6]  }
0x1e63   :  { %1393 = dma.done.wait [#allocation6], 128  }
0x1e64   :  { %1394 = vsyncadd [#allocation6], 4294967168 }
0x1e65   :  { %1048 = vsyncpa [#allocation5], 1 }
0x1e66   :  { %1049 = vsyncpa [#allocation8], 1 }
0x1e67   :  { %1050 = vsyncpa [#allocation11], 1 }
0x1e68   :  { %1051 = vsyncpa [#allocation6], 1 }

</bundles_post_ra>
